<compile_context>
chip_gen: v7x
topology: tpu7x:2x2x1
jax: 0.10.0
libtpu: 0.0.40
codegen_flags: <defaults>
</compile_context>

<pallas_src>
import numpy as np
import jax
import jax.numpy as jnp
from jax.experimental import pallas as pl
from jax.experimental.pallas import tpu as pltpu


def _round_up(x: int, m: int) -> int:
    return -(-x // m) * m


def _interp_matrix(out_size: int, in_size: int) -> np.ndarray:
    """1-D bilinear interpolation matrix, PyTorch align_corners=True semantics."""
    U = np.zeros((out_size, in_size), dtype=np.float32)
    if in_size == 1:
        U[:, 0] = 1.0
        return U
    scale = (in_size - 1) / (out_size - 1)
    for i in range(out_size):
        src = i * scale
        i0 = int(np.floor(src))
        i1 = min(i0 + 1, in_size - 1)
        w1 = src - i0
        U[i, i0] += 1.0 - w1
        U[i, i1] += w1
    return U


def _vmem_capacity_bytes() -> int:
    """Per-core VMEM capacity; conservative 64 MiB fallback (v7x-safe)."""
    try:
        info = pltpu.get_tpu_info()
        for attr in ("vmem_capacity_bytes", "vmem_size_bytes", "vmem_bytes"):
            v = getattr(info, attr, None)
            if v:
                return int(v)
    except Exception:
        pass
    try:
        kind = jax.devices()[0].device_kind.lower()
        if "v7" in kind or "7x" in kind:
            return 64 * 1024 * 1024
        if "v5" in kind or "v6" in kind:
            return 128 * 1024 * 1024
    except Exception:
        pass
    return 64 * 1024 * 1024


def _choose_tile_h(*, Hx, Hg, Wg, Wp, F_l, F_g, F_int, dt_bytes, scr_bytes,
                   vmem_budget, max_block_bytes=8 << 20):
    """Largest row tile TH (divisor of Hx) whose x block is <= ~8 MiB and whose
    total VMEM footprint (double-buffered x/out/g blocks + cached g1 scratch +
    j==0 temporaries, with sublane/lane padding) fits the budget."""
    def sub(c, nbytes):                       # sublane padding of channel dims
        return _round_up(c, 8 if nbytes >= 4 else 16)

    def lane(n):                              # lane padding of flat pixel dims
        return _round_up(n, 128)

    flp = sub(F_l, dt_bytes)
    fgp = sub(F_g, dt_bytes)
    fip = sub(F_int, 4)
    fis = sub(F_int, scr_bytes)

    fixed = (2 * fgp * lane(Hg * Wg) * dt_bytes      # coarse g block, double-buffered
             + fis * Hx * Wp * scr_bytes             # cached upsampled g1 (all tiles)
             + fip * lane(Hg * Wg) * 4               # j==0 temp: coarse conv result
             + fip * Hg * Wp * 4                     # j==0 temp: W-upsampled g1
             + (1 << 20))                            # weights / Uh / UwT / misc slack

    def fits(t):
        x_vmem = 4 * flp * t * Wp * dt_bytes         # x in (x2) + out (x2) buffers
        temps = 4 * fip * t * (Wp + lane(Hg))        # j==0 temp: H chunk + Uh bcast
        return fixed + x_vmem + temps <= vmem_budget

    divisors = [t for t in range(1, Hx + 1) if Hx % t == 0]
    feasible = [t for t in divisors if fits(t)]
    if not feasible:
        raise ValueError(
            "attention_block_pallas: even the smallest row tile does not fit the "
            f"VMEM budget ({vmem_budget} bytes); coarse map / cached g1 too large.")
    small = [t for t in feasible if F_l * t * Wp * dt_bytes <= max_block_bytes]
    return max(small) if small else min(feasible)


def _attention_kernel(x_ref, g_ref, uh_ref, uwt_ref,
                      wg_ref, wgb_ref, wx_ref, wxb_ref,
                      psiw_ref, psib_ref, out_ref, gw_ref):
    F_int = wg_ref.shape[0]
    Hx, Hg = uh_ref.shape
    Wg, Wp = uwt_ref.shape
    J = gw_ref.shape[0]
    TH = Hx // J
    j = pl.program_id(1)

    # ---- once per image (first row tile): g branch, conv at COARSE resolution,
    #      then separable x2 bilinear upsample, cached lane-flat in VMEM.
    @pl.when(j == 0)
    def _():
        # 1x1 conv + bias at (Hg x Wg): 4x fewer MACs than at full resolution.
        g1c = jnp.dot(wg_ref[...], g_ref[0],
                      preferred_element_type=jnp.float32) + wgb_ref[...]   # (F_int, Hg*Wg)
        # W upsample: one 2-D MXU matmul on (F_int*Hg, Wg).
        g1c = g1c.reshape(F_int * Hg, Wg)
        gw = jnp.dot(g1c, uwt_ref[...],
                     preferred_element_type=jnp.float32)                   # (F_int*Hg, Wp)
        gw = gw.reshape(F_int, Hg, Wp)
        # H upsample, chunked per row tile so each chunk is stored already
        # lane-flat -> per-tile reads need NO reshape / relayout.
        for jj in range(J):                     # J is static and small
            uh_t = jnp.broadcast_to(uh_ref[jj * TH:(jj + 1) * TH, :],
                                    (F_int, TH, Hg))
            gu = jnp.einsum('cph,chq->cpq', uh_t, gw,
                            preferred_element_type=jnp.float32)            # (F_int, TH, Wp)
            gw_ref[jj] = gu.reshape(F_int, TH * Wp).astype(gw_ref.dtype)

    # ---- per row tile: x branch + gate (all lane-dense, no per-tile relayout).
    x = x_ref[0]                                                           # (F_l, TH*Wp)
    x1 = jnp.dot(wx_ref[...], x,
                 preferred_element_type=jnp.float32) + wxb_ref[...]        # (F_int, TH*Wp)
    g1 = gw_ref[j].astype(jnp.float32)                                     # cached g branch
    p = jnp.maximum(g1 + x1, 0.0)
    # psi: F_int -> 1 conv as VPU multiply + sublane reduce (no width-1 matmul).
    s = jnp.sum(p * psiw_ref[...], axis=0, keepdims=True) + psib_ref[...]
    psi = jax.nn.sigmoid(s)                                                # (1, TH*Wp)
    out_ref[0] = (x * psi).astype(out_ref.dtype)


def attention_block_pallas(g_nchw, x_nchw, params):
    N, F_g, Hg, Wg = g_nchw.shape
    Nx, F_l, Hx, Wx = x_nchw.shape
    F_int = params["wg_w"].shape[0]
    assert Nx == N and Hx == 2 * Hg and Wx == 2 * Wg, "expects x2 upsample"

    dt = x_nchw.dtype
    dt_bytes = jnp.dtype(dt).itemsize
    scr_dt = jnp.float32 if dt == jnp.float32 else jnp.bfloat16
    scr_bytes = jnp.dtype(scr_dt).itemsize

    # ---- lane alignment: pad W to a multiple of 128 (lane-dense, unmasked stores).
    Wp = _round_up(Wx, 128)
    x_in = x_nchw if Wp == Wx else jnp.pad(
        x_nchw, ((0, 0), (0, 0), (0, 0), (0, Wp - Wx)))
    x_flat = x_in.reshape(N, F_l, Hx * Wp)         # metadata reshape, no copy
    g_flat = g_nchw.reshape(N, F_g, Hg * Wg)       # metadata reshape, no copy

    # Separable align_corners=True bilinear interpolation matrices.
    Uh = jnp.asarray(_interp_matrix(Hx, Hg))                    # (Hx, Hg)
    UwT_np = _interp_matrix(Wx, Wg).T                           # (Wg, Wx)
    if Wp != Wx:
        UwT_np = np.pad(UwT_np, ((0, 0), (0, Wp - Wx)))         # zero padded columns
    UwT = jnp.asarray(UwT_np)                                   # (Wg, Wp)

    # ---- generation-aware VMEM budget and byte-budgeted row tile.
    capacity = _vmem_capacity_bytes()
    vmem_limit = min(int(capacity * 3 // 4), 112 * 1024 * 1024)
    budget = int(vmem_limit * 0.85)
    TH = _choose_tile_h(Hx=Hx, Hg=Hg, Wg=Wg, Wp=Wp, F_l=F_l, F_g=F_g, F_int=F_int,
                        dt_bytes=dt_bytes, scr_bytes=scr_bytes, vmem_budget=budget)
    J = Hx // TH

    def const(shape):
        return pl.BlockSpec(shape, lambda n, j: (0,) * len(shape))

    out = pl.pallas_call(
        _attention_kernel,
        out_shape=jax.ShapeDtypeStruct((N, F_l, Hx * Wp), dt),
        grid=(N, J),
        in_specs=[
            pl.BlockSpec((1, F_l, TH * Wp), lambda n, j: (n, 0, j)),   # x row tile
            pl.BlockSpec((1, F_g, Hg * Wg), lambda n, j: (n, 0, 0)),   # coarse g (per image)
            const((Hx, Hg)),                                           # Uh
            const((Wg, Wp)),                                           # Uw^T (padded cols)
            const((F_int, F_g)), const((F_int, 1)),                    # W_g, b_g
            const((F_int, F_l)), const((F_int, 1)),                    # W_x, b_x
            const((F_int, 1)), const((1, 1)),                          # psi w, b
        ],
        out_specs=pl.BlockSpec((1, F_l, TH * Wp), lambda n, j: (n, 0, j)),
        scratch_shapes=[pltpu.VMEM((J, F_int, TH * Wp), scr_dt)],      # cached upsampled g1
        compiler_params=pltpu.CompilerParams(
            # n is embarrassingly parallel (megacore); j stays sequential because
            # the j == 0 step fills the per-image g1 cache used by the other tiles.
            dimension_semantics=("parallel", "arbitrary"),
            vmem_limit_bytes=vmem_limit),
    )(x_flat, g_flat, Uh, UwT,
      params["wg_w"], params["wg_b"],
      params["wx_w"], params["wx_b"],
      params["psi_w"], params["psi_b"])

    out = out.reshape(N, F_l, Hx, Wp)
    if Wp != Wx:
        out = out[..., :Wx]
    return out


def attention_block_ref(g, x, params, Uh, Uw):
    """Pure-JAX reference mirroring the PyTorch forward (NCHW, conv then upsample)."""
    g1 = jnp.einsum('fc,nchw->nfhw', params["wg_w"], g) \
        + params["wg_b"][:, 0][None, :, None, None]
    x1 = jnp.einsum('fc,nchw->nfhw', params["wx_w"], x) \
        + params["wx_b"][:, 0][None, :, None, None]
    g1_up = jnp.einsum('ph,qw,nfhw->nfpq', Uh, Uw, g1)
    p = jax.nn.relu(g1_up + x1)
    psi = jnp.einsum('f,nfhw->nhw', params["psi_w"][:, 0], p)[:, None] \
        + params["psi_b"][0, 0]
    psi = jax.nn.sigmoid(psi)
    return x * psi


if __name__ == "__main__":
    # Small deterministic example.  Channel counts are multiples of 8 (sublane
    # aligned) and W is a multiple of 128 (lane-dense fast path).
    F_g, F_l, F_int = 8, 8, 8
    N, Hg, Wg = 2, 8, 128            # g: coarse map; x: 2x upsampled -> 16 x 256
    Hx, Wx = 2 * Hg, 2 * Wg

    key = jax.random.PRNGKey(0)
    ks = jax.random.split(key, 8)
    # Conv2d(1x1) weights stored as (C_out, C_in); biases as (C_out, 1).
    params = dict(
        wg_w=jax.random.normal(ks[0], (F_int, F_g), jnp.float32) * 0.5,
        wg_b=jax.random.normal(ks[1], (F_int, 1), jnp.float32) * 0.1,
        wx_w=jax.random.normal(ks[2], (F_int, F_l), jnp.float32) * 0.5,
        wx_b=jax.random.normal(ks[3], (F_int, 1), jnp.float32) * 0.1,
        psi_w=jax.random.normal(ks[4], (F_int, 1), jnp.float32) * 0.5,
        psi_b=jax.random.normal(ks[5], (1, 1), jnp.float32) * 0.1,
    )
    g = jax.random.normal(ks[6], (N, F_g, Hg, Wg), jnp.float32)
    x = jax.random.normal(ks[7], (N, F_l, Hx, Wx), jnp.float32)

    out = attention_block_pallas(g, x, params)
    out = jax.block_until_ready(out)

    Uh = jnp.asarray(_interp_matrix(Hx, Hg))
    Uw = jnp.asarray(_interp_matrix(Wx, Wg))
    ref = attention_block_ref(g, x, params, Uh, Uw)
    np.testing.assert_allclose(np.asarray(out), np.asarray(ref), rtol=1e-5, atol=1e-5)

    print("KERNEL_OK")
</pallas_src>

<mosaic_0001>
module attributes {stable_mosaic.version = 11 : i64} {
  func.func @_attention_kernel(%arg0: i32, %arg1: i32, %arg2: memref<1x8x4096xf32, #tpu.memory_space<vmem>>, %arg3: memref<1x8x1024xf32, #tpu.memory_space<vmem>>, %arg4: memref<16x8xf32, #tpu.memory_space<vmem>>, %arg5: memref<128x256xf32, #tpu.memory_space<vmem>>, %arg6: memref<8x8xf32, #tpu.memory_space<vmem>>, %arg7: memref<8x1xf32, #tpu.memory_space<vmem>>, %arg8: memref<8x8xf32, #tpu.memory_space<vmem>>, %arg9: memref<8x1xf32, #tpu.memory_space<vmem>>, %arg10: memref<8x1xf32, #tpu.memory_space<vmem>>, %arg11: memref<1x1xf32, #tpu.memory_space<vmem>>, %arg12: memref<1x8x4096xf32, #tpu.memory_space<vmem>>, %arg13: memref<1x8x4096xf32, #tpu.memory_space<vmem>>) attributes {dimension_semantics = [#tpu.dimension_semantics<parallel>, #tpu.dimension_semantics<arbitrary>], iteration_bounds = array<i64: 2, 1>, scalar_prefetch = 0 : i64, scratch_operands = 1 : i64, tpu.core_type = #tpu.core_type<tc>, window_params = [{transform_indices = @transform_0, window_bounds = array<i64: 1, 8, 4096>}, {transform_indices = @transform_1, window_bounds = array<i64: 1, 8, 1024>}, {pipeline_mode = #tpu.pipeline_mode<synchronous>, transform_indices = @transform_2, window_bounds = array<i64: 16, 8>}, {pipeline_mode = #tpu.pipeline_mode<synchronous>, transform_indices = @transform_3, window_bounds = array<i64: 128, 256>}, {pipeline_mode = #tpu.pipeline_mode<synchronous>, transform_indices = @transform_4, window_bounds = array<i64: 8, 8>}, {pipeline_mode = #tpu.pipeline_mode<synchronous>, transform_indices = @transform_5, window_bounds = array<i64: 8, 1>}, {pipeline_mode = #tpu.pipeline_mode<synchronous>, transform_indices = @transform_6, window_bounds = array<i64: 8, 8>}, {pipeline_mode = #tpu.pipeline_mode<synchronous>, transform_indices = @transform_7, window_bounds = array<i64: 8, 1>}, {pipeline_mode = #tpu.pipeline_mode<synchronous>, transform_indices = @transform_8, window_bounds = array<i64: 8, 1>}, {pipeline_mode = #tpu.pipeline_mode<synchronous>, transform_indices = @transform_9, window_bounds = array<i64: 1, 1>}, {transform_indices = @transform_10, window_bounds = array<i64: 1, 8, 4096>}]} {
    %c0_i32 = arith.constant 0 : i32
    %0 = arith.cmpi eq, %arg1, %c0_i32 : i32
    %1 = arith.extui %0 : i1 to i32
    %c0_i32_0 = arith.constant 0 : i32
    %2 = arith.cmpi ne, %1, %c0_i32_0 : i32
    scf.if %2 {
      %c0_19 = arith.constant 0 : index
      %c0_20 = arith.constant 0 : index
      %34 = vector.load %arg6[%c0_19, %c0_20] : memref<8x8xf32, #tpu.memory_space<vmem>>, vector<8x8xf32>
      %c0_21 = arith.constant 0 : index
      %c0_22 = arith.constant 0 : index
      %c0_23 = arith.constant 0 : index
      %35 = vector.load %arg3[%c0_21, %c0_22, %c0_23] : memref<1x8x1024xf32, #tpu.memory_space<vmem>>, vector<1x8x1024xf32>
      %36 = vector.shape_cast %35 : vector<1x8x1024xf32> to vector<8x1024xf32>
      %cst_24 = arith.constant dense<0.000000e+00> : vector<8x1024xf32>
      %37 = tpu.matmul %34, %36, %cst_24 {dimension_numbers = #tpu.dot_dimension_numbers<[1], [0], [0], [1], [0, 0, 1, 1], [], []>} : vector<8x8xf32>, vector<8x1024xf32>, vector<8x1024xf32> -> vector<8x1024xf32>
      %c0_25 = arith.constant 0 : index
      %c0_26 = arith.constant 0 : index
      %38 = vector.load %arg7[%c0_25, %c0_26] : memref<8x1xf32, #tpu.memory_space<vmem>>, vector<8x1xf32>
      %39 = vector.broadcast %38 : vector<8x1xf32> to vector<8x1024xf32>
      %40 = arith.addf %37, %39 : vector<8x1024xf32>
      %41 = vector.shape_cast %40 : vector<8x1024xf32> to vector<64x128xf32>
      %c0_27 = arith.constant 0 : index
      %c0_28 = arith.constant 0 : index
      %42 = vector.load %arg5[%c0_27, %c0_28] : memref<128x256xf32, #tpu.memory_space<vmem>>, vector<128x256xf32>
      %cst_29 = arith.constant dense<0.000000e+00> : vector<64x256xf32>
      %43 = tpu.matmul %41, %42, %cst_29 {dimension_numbers = #tpu.dot_dimension_numbers<[1], [0], [0], [1], [0, 0, 1, 1], [], []>} : vector<64x128xf32>, vector<128x256xf32>, vector<64x256xf32> -> vector<64x256xf32>
      %44 = vector.shape_cast %43 : vector<64x256xf32> to vector<8x8x256xf32>
      %c0_30 = arith.constant 0 : index
      %c0_31 = arith.constant 0 : index
      %45 = vector.load %arg4[%c0_30, %c0_31] : memref<16x8xf32, #tpu.memory_space<vmem>>, vector<16x8xf32>
      %46 = vector.shape_cast %45 : vector<16x8xf32> to vector<1x16x8xf32>
      %47 = vector.broadcast %46 : vector<1x16x8xf32> to vector<8x16x8xf32>
      "tpu.trace_start"() <{level = 10 : i32, message = "cph,chq->cpq"}> : () -> ()
      %cst_32 = arith.constant dense<0.000000e+00> : vector<8x16x256xf32>
      %48 = tpu.matmul %47, %44, %cst_32 {dimension_numbers = #tpu.dot_dimension_numbers<[2], [1], [1], [2], [0, 0, 0, 1, 1, 2], [0], [0]>} : vector<8x16x8xf32>, vector<8x8x256xf32>, vector<8x16x256xf32> -> vector<8x16x256xf32>
      "tpu.trace_stop"() : () -> ()
      %49 = vector.shape_cast %48 : vector<8x16x256xf32> to vector<8x4096xf32>
      %c0_33 = arith.constant 0 : index
      %c0_34 = arith.constant 0 : index
      %c0_35 = arith.constant 0 : index
      %50 = vector.load %arg13[%c0_33, %c0_34, %c0_35] : memref<1x8x4096xf32, #tpu.memory_space<vmem>>, vector<1x8x4096xf32>
      %51 = vector.shape_cast %50 : vector<1x8x4096xf32> to vector<8x4096xf32>
      %52 = vector.shape_cast %49 : vector<8x4096xf32> to vector<1x8x4096xf32>
      tpu.vector_store %arg13[%c0_33, %c0_34, %c0_35], %52 {strides = array<i32>} : memref<1x8x4096xf32, #tpu.memory_space<vmem>>, vector<1x8x4096xf32>,
    } else {
    }
    %c0 = arith.constant 0 : index
    %c0_1 = arith.constant 0 : index
    %c0_2 = arith.constant 0 : index
    %3 = vector.load %arg2[%c0, %c0_1, %c0_2] : memref<1x8x4096xf32, #tpu.memory_space<vmem>>, vector<1x8x4096xf32>
    %4 = vector.shape_cast %3 : vector<1x8x4096xf32> to vector<8x4096xf32>
    %c0_3 = arith.constant 0 : index
    %c0_4 = arith.constant 0 : index
    %5 = vector.load %arg8[%c0_3, %c0_4] : memref<8x8xf32, #tpu.memory_space<vmem>>, vector<8x8xf32>
    %cst = arith.constant dense<0.000000e+00> : vector<8x4096xf32>
    %6 = tpu.matmul %5, %4, %cst {dimension_numbers = #tpu.dot_dimension_numbers<[1], [0], [0], [1], [0, 0, 1, 1], [], []>} : vector<8x8xf32>, vector<8x4096xf32>, vector<8x4096xf32> -> vector<8x4096xf32>
    %c0_5 = arith.constant 0 : index
    %c0_6 = arith.constant 0 : index
    %7 = vector.load %arg9[%c0_5, %c0_6] : memref<8x1xf32, #tpu.memory_space<vmem>>, vector<8x1xf32>
    %8 = vector.broadcast %7 : vector<8x1xf32> to vector<8x4096xf32>
    %9 = arith.addf %6, %8 : vector<8x4096xf32>
    %10 = arith.index_cast %arg1 : i32 to index
    %c0_7 = arith.constant 0 : index
    %c0_8 = arith.constant 0 : index
    %11 = vector.load %arg13[%10, %c0_7, %c0_8] : memref<1x8x4096xf32, #tpu.memory_space<vmem>>, vector<1x8x4096xf32>
    %12 = vector.shape_cast %11 : vector<1x8x4096xf32> to vector<8x4096xf32>
    %13 = arith.addf %12, %9 : vector<8x4096xf32>
    %cst_9 = arith.constant 0.000000e+00 : f32
    %14 = vector.broadcast %cst_9 : f32 to vector<8x4096xf32>
    %15 = arith.maximumf %13, %14 : vector<8x4096xf32>
    %c0_10 = arith.constant 0 : index
    %c0_11 = arith.constant 0 : index
    %16 = vector.load %arg10[%c0_10, %c0_11] : memref<8x1xf32, #tpu.memory_space<vmem>>, vector<8x1xf32>
    %17 = vector.broadcast %16 : vector<8x1xf32> to vector<8x4096xf32>
    %18 = arith.mulf %15, %17 : vector<8x4096xf32>
    %cst_12 = arith.constant dense<0.000000e+00> : vector<4096xf32>
    %19 = vector.multi_reduction <add>, %18, %cst_12 [0] : vector<8x4096xf32> to vector<4096xf32>
    %20 = vector.shape_cast %19 : vector<4096xf32> to vector<1x4096xf32>
    %c0_13 = arith.constant 0 : index
    %c0_14 = arith.constant 0 : index
    %21 = vector.load %arg11[%c0_13, %c0_14] : memref<1x1xf32, #tpu.memory_space<vmem>>, vector<1x1xf32>
    %22 = vector.broadcast %21 : vector<1x1xf32> to vector<1x4096xf32>
    %23 = arith.addf %20, %22 : vector<1x4096xf32>
    %24 = arith.negf %23 : vector<1x4096xf32>
    %25 = math.exp %24 : vector<1x4096xf32>
    %cst_15 = arith.constant 1.000000e+00 : f32
    %26 = vector.broadcast %cst_15 : f32 to vector<1x4096xf32>
    %27 = arith.addf %26, %25 : vector<1x4096xf32>
    %28 = arith.divf %26, %27 : vector<1x4096xf32>
    %29 = vector.broadcast %28 : vector<1x4096xf32> to vector<8x4096xf32>
    %30 = arith.mulf %4, %29 : vector<8x4096xf32>
    %c0_16 = arith.constant 0 : index
    %c0_17 = arith.constant 0 : index
    %c0_18 = arith.constant 0 : index
    %31 = vector.load %arg12[%c0_16, %c0_17, %c0_18] : memref<1x8x4096xf32, #tpu.memory_space<vmem>>, vector<1x8x4096xf32>
    %32 = vector.shape_cast %31 : vector<1x8x4096xf32> to vector<8x4096xf32>
    %33 = vector.shape_cast %30 : vector<8x4096xf32> to vector<1x8x4096xf32>
    tpu.vector_store %arg12[%c0_16, %c0_17, %c0_18], %33 {strides = array<i32>} : memref<1x8x4096xf32, #tpu.memory_space<vmem>>, vector<1x8x4096xf32>,
    return
  }
  func.func @transform_0(%arg0: i32, %arg1: i32) -> (i32, i32, i32) {
    %c0_i32 = arith.constant 0 : i32
    %c0_i32_0 = arith.constant 0 : i32
    return %arg0, %c0_i32, %arg1 : i32, i32, i32
  }
  func.func @transform_1(%arg0: i32, %arg1: i32) -> (i32, i32, i32) {
    %c0_i32 = arith.constant 0 : i32
    %c0_i32_0 = arith.constant 0 : i32
    %c0_i32_1 = arith.constant 0 : i32
    return %arg0, %c0_i32, %c0_i32_0 : i32, i32, i32
  }
  func.func @transform_2(%arg0: i32, %arg1: i32) -> (i32, i32) {
    %c0_i32 = arith.constant 0 : i32
    %c0_i32_0 = arith.constant 0 : i32
    %c0_i32_1 = arith.constant 0 : i32
    return %c0_i32, %c0_i32_0 : i32, i32
  }
  func.func @transform_3(%arg0: i32, %arg1: i32) -> (i32, i32) {
    %c0_i32 = arith.constant 0 : i32
    %c0_i32_0 = arith.constant 0 : i32
    %c0_i32_1 = arith.constant 0 : i32
    return %c0_i32, %c0_i32_0 : i32, i32
  }
  func.func @transform_4(%arg0: i32, %arg1: i32) -> (i32, i32) {
    %c0_i32 = arith.constant 0 : i32
    %c0_i32_0 = arith.constant 0 : i32
    %c0_i32_1 = arith.constant 0 : i32
    return %c0_i32, %c0_i32_0 : i32, i32
  }
  func.func @transform_5(%arg0: i32, %arg1: i32) -> (i32, i32) {
    %c0_i32 = arith.constant 0 : i32
    %c0_i32_0 = arith.constant 0 : i32
    %c0_i32_1 = arith.constant 0 : i32
    return %c0_i32, %c0_i32_0 : i32, i32
  }
  func.func @transform_6(%arg0: i32, %arg1: i32) -> (i32, i32) {
    %c0_i32 = arith.constant 0 : i32
    %c0_i32_0 = arith.constant 0 : i32
    %c0_i32_1 = arith.constant 0 : i32
    return %c0_i32, %c0_i32_0 : i32, i32
  }
  func.func @transform_7(%arg0: i32, %arg1: i32) -> (i32, i32) {
    %c0_i32 = arith.constant 0 : i32
    %c0_i32_0 = arith.constant 0 : i32
    %c0_i32_1 = arith.constant 0 : i32
    return %c0_i32, %c0_i32_0 : i32, i32
  }
  func.func @transform_8(%arg0: i32, %arg1: i32) -> (i32, i32) {
    %c0_i32 = arith.constant 0 : i32
    %c0_i32_0 = arith.constant 0 : i32
    %c0_i32_1 = arith.constant 0 : i32
    return %c0_i32, %c0_i32_0 : i32, i32
  }
  func.func @transform_9(%arg0: i32, %arg1: i32) -> (i32, i32) {
    %c0_i32 = arith.constant 0 : i32
    %c0_i32_0 = arith.constant 0 : i32
    %c0_i32_1 = arith.constant 0 : i32
    return %c0_i32, %c0_i32_0 : i32, i32
  }
  func.func @transform_10(%arg0: i32, %arg1: i32) -> (i32, i32, i32) {
    %c0_i32 = arith.constant 0 : i32
    %c0_i32_0 = arith.constant 0 : i32
    return %arg0, %c0_i32, %arg1 : i32, i32, i32
  }
}

</mosaic_0001>

<bundles_post_ra>
// kernel: tpu_custom_call.1
= control target key start
LH: loop header
LB: loop body
LE: loop exit
PB: predicated region body
PF: predicated region fallthrough
CT: control target
= control target key end

     0   :  { %s5918_s0 = inlined_call_operand.hbm [shape: f32[2,8,4096], index: 0, kind: input, shape index: {}]   ;;  %s5919_s1 = inlined_call_operand.hbm [shape: f32[2,8,1024], index: 1, kind: input, shape index: {}]   ;;  %s5920_s2 = inlined_call_operand.vmem [shape: f32[16,8], index: 2, kind: input, shape index: {}]   ;;  %s5921_s3 = inlined_call_operand.hbm [shape: f32[128,256], index: 3, kind: input, shape index: {}]   ;;  %s5922_s4 = inlined_call_operand.vmem [shape: f32[8,8], index: 4, kind: input, shape index: {}]   ;;  %s5923_s5 = inlined_call_operand.vmem [shape: f32[8,1], index: 5, kind: input, shape index: {}]   ;;  %s5924_s6 = inlined_call_operand.vmem [shape: f32[8,8], index: 6, kind: input, shape index: {}]   ;;  %s5925_s7 = inlined_call_operand.vmem [shape: f32[8,1], index: 7, kind: input, shape index: {}]   ;;  %s5926_s8 = inlined_call_operand.vmem [shape: f32[8,1], index: 8, kind: input, shape index: {}]   ;;  %s5927_s9 = inlined_call_operand.<no memory space> [shape: f32[1,1], index: 9, kind: input, shape index: {}]   ;;  %s5928_s10 = inlined_call_operand.hbm [shape: f32[2,8,4096], index: 10, kind: output, shape index: {}]  }
   0x1   :  { %5950 = sst [smem:[#allocation36_spill]] %s5918_s0  ;;  %v15_v0 = vstv %s5927_s9 }
   0x2   :  { %5951 = sst [smem:[#allocation37_spill]] %s5921_s3  ;;  %16 = vst [vmem:[#allocation3] sm:$0x1] %v15_v0 }
   0x3   :  { %17 = vsyncpa [#allocation5], 0 }
   0x4   :  { %19 = vsyncpa [#allocation5 + $0x1], 0 }
   0x5   :  { %20 = vsyncpa [#allocation8], 0 }
   0x6   :  { %22 = vsyncpa [#allocation8 + $0x1], 0 }
   0x7   :  { %23 = vsyncpa [#allocation6], 0 }
   0x8   :  { %25 = vsyncpa [#allocation6 + $0x1], 0  ;;  %s4815_s15 = smov 0   ;;  %s4817_s16 = smov 0  }
   0x9   :  { %s4819_s17 = smov 0   ;;  %s4821_s18 = smov 0  }
   0xa   :  { %s4823_s19 = smov 0   ;;  %s4825_s20 = smov 0  }
   0xb LB: > { %5952 = sst [smem:[#allocation15_spill]] %s4724_s15  ;;  %s4846_s9 = sadd.s32 4294967295, %s4744_s20   ;;  %s4744_s20 = sphi %s4825_s20, %s31_s20   ;;  %s4740_s19 = sphi %s4823_s19, %s6025_s19   ;;  %s4736_s18 = sphi %s4821_s18, %s6024_s18   ;;  %s4732_s17 = sphi %s4819_s17, %s6020_s17   ;;  %s4728_s16 = sphi %s4817_s16, %s6023_s16   ;;  %s4724_s15 = sphi %s4815_s15, %s6022_s15  }
   0xc   : > { %5953 = sst [smem:[#allocation16_spill]] %s4732_s17  ;;  %s4196_s21 = sadd.s32 4294967294, %s4744_s20  }
   0xd   : > { %p65_p0 = scmp.ne.s32.totalorder %s4728_s16, %s4724_s15  ;;  %p5929_p1 = scmp.eq.s32.totalorder %s4846_s9, 0 }
   0xe   : > { %p291_p3 = scmp.eq.s32.totalorder %s4196_s21, 1  ;;  %p4197_p5 = scmp.ge.s32.totalorder %s4744_s20, 1 }
   0xf   : > { %p4855_p4 = por %p5929_p1, %p65_p0  ;;  %p298_p7 = scmp.lt.s32.totalorder %s4744_s20, 3 }
  0x10   : > { %p4860_p6 = por %p291_p3, %p65_p0  ;;  %s4746_s25 = smov [#allocation9]  }
  0x11   : > { %s5954_s22 = scalar_select %p4855_p4, 1, 0 }
  0x12   : > { %s5955_s23 = scalar_select %p4860_p6, 1, 0 }
  0x13   : > { %p4865_p8 = pnand %p4197_p5, %p298_p7  ;;  %s313_s26 = sshll.u32 %s4746_s25, 4  ;;  %s314_s26 = int_to_ptr.vmem [resolvable:$true] %s313_s26 }
  0x14   : > { %5956 = sst [smem:[#allocation17_spill]] %s5955_s23  ;;  %s43_s28 = sadd.s32 1, %s4740_s19 }
  0x15   : > { %s5957_s24 = scalar_select %p4865_p8, 1, 0 }
  0x16   : > { %p4329_p9 = pneg %p4865_p8  ;;  %s5959_s3 = sld [smem:[#allocation37_spill]] }
  0x18   : > { %p4874_p11 = pnand %p4329_p9, %p5929_p1 }
  0x1a   : > { %p4568_p13 = pneg %p4874_p11 }
  0x1c   : > { %s4566_s11 = scalar_lea.hbm %s5959_s3, 4096 }
  0x1d   : > { %p4567_p12 = scmp.ne.s32.totalorder %s5959_s3, %s4566_s11  ;;  %p4573_p5 = scmp.lt.u32.totalorder %s4566_s11, %s5959_s3 }
  0x1f   : > { %p4569_p0 = pnand %p4568_p13, %p4567_p12 }
  0x21   : > { %p4570_p3 = pneg %p4569_p0 }
  0x23   : > { %p4575_p7 = pnand %p4573_p5, %p4570_p3 }
  0x25   : > { %4578 = shalt.err (!%p4575_p7)
}
  0x26   : > { %s4579_s25 = scalar_lea.vmem %s314_s26, 4096  ;;  %p4587_p2 = scmp.lt.s32.totalorder %s314_s26, %s314_s26 }
  0x27   : > { %p4580_p9 = scmp.ne.s32.totalorder %s314_s26, %s4579_s25  ;;  %p4588_p6 = scmp.lt.s32.totalorder %s4579_s25, %s4579_s25 }
  0x29   : > { %p4582_p10 = pnand %p4580_p9, %p4568_p13  ;;  %p4589_p4 = por %p4588_p6, %p4587_p2 }
  0x2b   : > { %p4583_p1 = pneg %p4582_p10 }
  0x2d   : > { %p4590_p8 = pnand %p4589_p4, %p4583_p1 }
  0x2f   : > { %4593 = shalt.err (!%p4590_p8)
}
  0x30   : > { %s4747_s29 = smov 256   ;;  %s4748_s30 = smov 16  }
  0x31   : > { %4332 = dma.hbm_to_vmem [thread:$0]  (!%p4874_p11), %s5959_s3, 4096, %s314_s26, [#allocation8], %s4747_s29, %s4747_s29, %s4748_s30  }
  0x32   : > { %p45_p1 = scmp.ge.s32.totalorder %s43_s28, 2  ;;  %s52_s13 = sadd.s32 1, %s4732_s17 }
  0x33   : > { %p59_p2 = scmp.ne.s32.totalorder %s4732_s17, %s4728_s16  ;;  %p60_p4 = scmp.eq.s32.totalorder %s4744_s20, 0 }
  0x34   : > { %s6027_s28 = smov (%p45_p1, %s43_s28), 0  ;;  %p5962_p8 = scmp.eq.s32.totalorder %s4846_s9, 1 }
  0x35   : > { %5960 = sst [smem:[#allocation18_spill]] %s6027_s28  ;;  %p4901_p6 = por %p60_p4, %p59_p2 }
  0x36   : > { %p4907_p10 = por %p5962_p8, %p59_p2  ;;  %s47_s21 = ssub.s32 %s4740_s19, %s6027_s28 }
  0x37   : > { %p4345_p11 = scmp.lt.s32.totalorder %s4744_s20, 2  ;;  %p50_p12 = scmp.eq.s32.totalorder %s47_s21, 0 }
  0x38   : > { %s5963_s27 = scalar_select %p4907_p10, 1, 0 }
  0x39   : > { %s4915_s26 = sand.u32 1, %s4732_s17   ;;  %s4284_s30 = sshll.u32 %s4740_s19, 12 }
  0x3a   : > { %s4200_s25 = sshll.u32 %s4915_s26, 8  ;;  %s5965_s0 = sld [smem:[#allocation36_spill]] }
  0x3b   : > { %s4919_s29 = scalar_select %p50_p12, %s4732_s17, %s52_s13  }
  0x3c   : > { %s349_s28 = scalar_lea.vmem [#allocation4], %s4200_s25  ;;  %p4931_p13 = pnand %p4345_p11, %p4901_p6 }
  0x3d   : > { %5964 = sst [smem:[#allocation19_spill]] %s4919_s29  ;;  %s359_s21 = sshll.u32 %s349_s28, 4  ;;  %s4927_s21 = int_to_ptr.vmem [resolvable:$true] %s359_s21 }
  0x3e   : > { %s4203_s29 = sshll.u32 %s4915_s26, 6  ;;  %s346_s11 = scalar_lea.sflag [#allocation5], %s4915_s26 }
  0x3f   : > { %p4596_p3 = pneg %p4931_p13 }
  0x40   : > { %s4925_s3 = scalar_lea.hbm %s5965_s0, %s4284_s30  ;;  %s4599_s14 = scalar_lea.hbm %s5965_s0, 8192 }
  0x41   : > { %s4594_s30 = scalar_lea.hbm %s4925_s3, 4096  ;;  %p4600_p9 = scmp.lt.u32.totalorder %s4925_s3, %s5965_s0 }
  0x42   : > { %p4595_p0 = scmp.ne.s32.totalorder %s4925_s3, %s4594_s30  ;;  %p4601_p1 = scmp.lt.u32.totalorder %s4599_s14, %s4594_s30 }
  0x43   : > { %p4603_p4 = scmp.lt.u32.totalorder %s4594_s30, %s4925_s3 }
  0x44   : > { %p4597_p5 = pnand %p4596_p3, %p4595_p0  ;;  %p4602_p2 = por %p4601_p1, %p4600_p9 }
  0x46   : > { %p4598_p7 = pneg %p4597_p5  ;;  %p4604_p6 = por %p4603_p4, %p4602_p2 }
  0x48   : > { %p4605_p8 = pnand %p4604_p6, %p4598_p7 }
  0x4a   : > { %4608 = shalt.err (!%p4605_p8)
}
  0x4b   : > { %s4609_s13 = scalar_lea.vmem %s4927_s21, 4096  ;;  %s4749_s28 = smov [#allocation4]  }
  0x4c   : > { %p4610_p11 = scmp.ne.s32.totalorder %s4927_s21, %s4609_s13  ;;  %s4614_s25 = sshll.u32 %s4749_s28, 4  ;;  %s4615_s25 = int_to_ptr.vmem [resolvable:$false] %s4614_s25 }
  0x4d   : > { %s4616_s17 = scalar_lea.vmem %s4615_s25, 8192  ;;  %p4617_p5 = scmp.lt.s32.totalorder %s4927_s21, %s4615_s25 }
  0x4e   : > { %p4612_p12 = pnand %p4610_p11, %p4596_p3  ;;  %p4618_p9 = scmp.lt.s32.totalorder %s4616_s17, %s4609_s13 }
  0x50   : > { %p4613_p0 = pneg %p4612_p12  ;;  %p4619_p1 = por %p4618_p9, %p4617_p5 }
  0x52   : > { %p4620_p2 = pnand %p4619_p1, %p4613_p0 }
  0x54   : > { %4623 = shalt.err (!%p4620_p2)
}
  0x55   : > { %4336 = dma.hbm_to_vmem [thread:$0]  (!%p4931_p13), %s4925_s3, 4096, %s4927_s21, %s346_s11  }
  0x56   : > { %s4285_s30 = sshll.u32 %s4740_s19, 10  ;;  %s370_s13 = scalar_lea.vmem [#allocation7], %s4203_s29 }
  0x57   : > { %s4967_s28 = scalar_lea.hbm %s5919_s1, %s4285_s30  ;;  %s378_s25 = sshll.u32 %s370_s13, 4  ;;  %s379_s25 = int_to_ptr.vmem [resolvable:$true] %s378_s25 }
  0x58   : > { %s5967_s17 = sand.u32 1, %s4744_s20   ;;  %s4624_s15 = scalar_lea.hbm %s4967_s28, 1024 }
  0x59   : > { %s367_s0 = scalar_lea.sflag [#allocation8], %s5967_s17  ;;  %p4625_p7 = scmp.ne.s32.totalorder %s4967_s28, %s4624_s15 }
  0x5a   : > { %s4629_s11 = scalar_lea.hbm %s5919_s1, 2048  ;;  %p4630_p8 = scmp.lt.u32.totalorder %s4967_s28, %s5919_s1 }
  0x5b   : > { %p4627_p4 = pnand %p4625_p7, %p4596_p3  ;;  %p4631_p11 = scmp.lt.u32.totalorder %s4629_s11, %s4624_s15 }
  0x5c   : > { %p4633_p0 = scmp.lt.u32.totalorder %s4624_s15, %s4967_s28 }
  0x5d   : > { %p4628_p6 = pneg %p4627_p4  ;;  %p4632_p12 = por %p4631_p11, %p4630_p8 }
  0x5f   : > { %p4634_p5 = por %p4633_p0, %p4632_p12 }
  0x61   : > { %p4635_p9 = pnand %p4634_p5, %p4628_p6 }
  0x63   : > { %4638 = shalt.err (!%p4635_p9)
}
  0x64   : > { %s4639_s29 = scalar_lea.vmem %s379_s25, 1024  ;;  %s4750_s14 = smov [#allocation7]  }
  0x65   : > { %p4640_p1 = scmp.ne.s32.totalorder %s379_s25, %s4639_s29  ;;  %s4644_s12 = sshll.u32 %s4750_s14, 4  ;;  %s4645_s12 = int_to_ptr.vmem [resolvable:$false] %s4644_s12 }
  0x66   : > { %s4646_s13 = scalar_lea.vmem %s4645_s12, 2048  ;;  %p4647_p4 = scmp.lt.s32.totalorder %s379_s25, %s4645_s12 }
  0x67   : > { %p4642_p2 = pnand %p4640_p1, %p4596_p3  ;;  %p4648_p10 = scmp.lt.s32.totalorder %s4646_s13, %s4639_s29 }
  0x69   : > { %p4643_p7 = pneg %p4642_p2  ;;  %p4649_p8 = por %p4648_p10, %p4647_p4 }
  0x6b   : > { %p4650_p11 = pnand %p4649_p8, %p4643_p7 }
  0x6d   : > { %4653 = shalt.err (!%p4650_p11)
}
  0x6e   : > { %4339 = dma.hbm_to_vmem [thread:$0]  (!%p4931_p13), %s4967_s28, 1024, %s379_s25, %s367_s0  }
  0x6f   : > { %p5968_p6 = scmp.ne.s32.totalorder %s5957_s24, 0 }
  0x71   : > { %387 = sbr.rel (%p5968_p6) target bundleno = 1032 (0x408), region = 60 }
  0x78   : > { %s4995_s15 = sand.u32 1, %s4728_s16   ;;  %p5969_p10 = scmp.ne.s32.totalorder %s5954_s22, 0 }
  0x79   : > { %s4207_s17 = sshll.u32 %s4995_s15, 8  ;;  %s390_s3 = scalar_lea.sflag [#allocation5], %s4995_s15 }
  0x7a   : > { %s5001_s21 = scalar_lea.vmem [#allocation4], %s4207_s17 }
  0x7b   : > { %4707 = dma.done.wait (%p5969_p10), %s390_s3, 4096  }
  0x7c   : > { %4709 = vsyncadd (%p5969_p10), %s390_s3, 4294963200  ;;  %s398_s0 = sand.u32 1, %s4846_s9   ;;  %s4208_s23 = sshll.u32 %s4995_s15, 6 }
  0x7d   : > { %s399_s24 = scalar_lea.sflag [#allocation8], %s398_s0  ;;  %s402_s28 = scalar_lea.vmem [#allocation7], %s4208_s23 }
  0x7e   : > { %4711 = dma.done.wait (%p5969_p10), %s399_s24, 1024  }
  0x7f   : > { %4713 = vsyncadd (%p5969_p10), %s399_s24, 4294966272  ;;  %p5970_p13 = scmp.eq.s32.totalorder %s4846_s9, 0 }
  0x81   : > { %4715 = dma.done.wait (%p5970_p13), [#allocation8], 4096   ;;  %p5971_p3 = pmov %p5970_p13 }
  0x82   : > { %v4751_v1 = vmov 0.0   ;;  %v4752_v2 = vmov 0   ;;  %v456_v3 = vld [vmem:[%s402_s28 + $0x8] sm:$0xff]  ;;  %v458_v4 = vld [vmem:[%s402_s28 + $0x18] sm:$0xff]  ;;  %v455_v5 = vld [vmem:[%s402_s28] sm:$0xff]  ;;  %vm469_vm0 = vcmask 64512  }
  0x83   : > { %4717 = vsyncadd (%p5971_p3), [#allocation8], 4294963200  ;;  %537 = vmatprep.mubr.f32.mxu0 %v4751_v1  ;;  %608 = vmatprep.mubr.f32.mxu1 %v4751_v1  ;;  %v457_v6 = vld [vmem:[%s402_s28 + $0x10] sm:$0xff]  ;;  %v454_v7 = vld [vmem:[%s5922_s4] sm:$0xff]  ;;  %v4753_v63 = vmov 1966171168  }
  0x84   : > { %4404 = vset.pattern.permute.xlu0 %v4752_v2  ;;  %4405 = vset.pattern.permute.xlu1 %v4752_v2  ;;  %v460_v8 = vld [vmem:[%s402_s28 + $0x28] sm:$0xff]  ;;  %v462_v9 = vld [vmem:[%s402_s28 + $0x38] sm:$0xff]  ;;  %v459_v10 = vld [vmem:[%s402_s28 + $0x20] sm:$0xff]  ;;  %v774_v0 = vunpack.c.l.s4 %v4753_v63  ;;  %v776_v2 = vlaneseq  ;;  %p6014_p0 = scmp.ne.s32.totalorder %s5963_s27, 0 }
  0x85   : > { %473 = vmatprep.subr.mxu0 %v456_v3  ;;  %544 = vmatprep.subr.mxu1 %v458_v4  ;;  %v461_v11 = vld [vmem:[%s402_s28 + $0x30] sm:$0xff]  ;;  %v910_v12 = vld [vmem:[#allocation9 + $0x8] sm:$0xff]  ;;  %v912_v13 = vld [vmem:[#allocation9 + $0x18] sm:$0xff]  ;;  %s5783_s28 = scalar_lea.vmem [#allocation10], %s4207_s17  ;;  %s4286_s17 = sshll.u32 %s4736_s18, 12 }
  0x86   : > { %474 = vmatpush1.msra.mxu0 %v455_v5  ;;  %545 = vmatpush1.msra.mxu1 %v457_v6  ;;  %v909_v14 = vld [vmem:[#allocation9] sm:$0xff]  ;;  %v911_v15 = vld [vmem:[#allocation9 + $0x10] sm:$0xff]  ;;  %v4287_v17 = vpack.c.bf16 %v912_v13, %v910_v12  ;;  %v914_v19 = vld [vmem:[#allocation9 + $0x28] sm:$0xff]  ;;  %v775_v4 = vunpack.c.0.s8 %v774_v0  ;;  %v5037_v5 = vshrl.u32 %v776_v2, 7  ;;  %s4077_s22 = sshll.u32 %s5783_s28, 4  ;;  %s5867_s11 = scalar_lea.hbm %s5928_s10, %s4286_s17  ;;  %s5869_s22 = int_to_ptr.vmem [resolvable:$true] %s4077_s22 }
  0x87   : > { %4211 = vmatmul.mubr.msk.f32.vlgmr.msra.gmra.mrb[0].mxu0 %vm469_vm0, %v454_v7  ;;  %4212 = vmatmul.mubr.msk.f32.vlgmr.msra.gmra.mrb[0].mxu1 %vm469_vm0, %v454_v7  ;;  %v463_v16 = vld [vmem:[%s5923_s5] sm:$0xff]  ;;  %v4289_v18 = vpack.c.bf16 %v911_v15, %v909_v14  ;;  %v915_v23 = vld [vmem:[#allocation9 + $0x30] sm:$0xff]  ;;  %v918_v24 = vld [vmem:[#allocation9 + $0x48] sm:$0xff]  ;;  %s4061_s18 = scalar_lea.sflag [#allocation6], %s4995_s15  ;;  %s4654_s26 = scalar_lea.vmem %s5869_s22, 4096 }
  0x88   : > { %615 = vmatprep.subr.mxu0 %v460_v8  ;;  %686 = vmatprep.subr.mxu1 %v462_v9  ;;  %v916_v20 = vld [vmem:[#allocation9 + $0x38] sm:$0xff]  ;;  %v913_v22 = vld [vmem:[#allocation9 + $0x20] sm:$0xff]  ;;  %v919_v30 = vld [vmem:[#allocation9 + $0x50] sm:$0xff]  ;;  %v778_v13 = vsub.s32 %v775_v4, %v5037_v5  ;;  %p4655_p12 = scmp.ne.s32.totalorder %s5869_s22, %s4654_s26 }
  0x89   : > { %616 = vmatpush1.msra.mxu0 %v459_v10  ;;  %679 = vmatprep.mubr.f32.mxu0 %v4751_v1  ;;  %v4291_v21 = vpack.c.bf16 %v916_v20, %v914_v19  ;;  %v920_v25 = vld [vmem:[#allocation9 + $0x58] sm:$0xff]  ;;  %v4293_v27 = vpack.c.bf16 %v915_v23, %v913_v22  ;;  %v917_v29 = vld [vmem:[#allocation9 + $0x40] sm:$0xff]  ;;  %v922_v31 = vld [vmem:[#allocation9 + $0x68] sm:$0xff] }
  0x8a   : > { %687 = vmatpush1.msra.mxu1 %v461_v11  ;;  %750 = vmatprep.mubr.f32.mxu1 %v4751_v1  ;;  %v2287_v26 = vld [vmem:[%s5925_s7] sm:$0xff]  ;;  %v4295_v28 = vpack.c.bf16 %v920_v25, %v918_v24  ;;  %v4297_v33 = vpack.c.bf16 %v919_v30, %v917_v29  ;;  %v923_v36 = vld [vmem:[#allocation9 + $0x70] sm:$0xff]  ;;  %v926_v38 = vld [vmem:[#allocation9 + $0x88] sm:$0xff]  ;;  %p4656_p5 = pnand %p4655_p12, %p6014_p0 }
  0x8b   : > { %4213 = vmatmul.mubr.msk.f32.vlgmr.msra.gmra.mrb[2].mxu0 %vm469_vm0, %v454_v7  ;;  %4214 = vmatmul.mubr.msk.f32.vlgmr.msra.gmra.mrb[2].mxu1 %vm469_vm0, %v454_v7  ;;  %v924_v32 = vld [vmem:[#allocation9 + $0x78] sm:$0xff]  ;;  %v921_v35 = vld [vmem:[#allocation9 + $0x60] sm:$0xff]  ;;  %v927_v42 = vld [vmem:[#allocation9 + $0x90] sm:$0xff] }
  0x8c   : > { %466 = vperm.xlu0 %4404, %v463_v16   ;;  %4288 = vmatprep.subr.bf16.mxu0 %v4287_v17  ;;  %v4299_v34 = vpack.c.bf16 %v924_v32, %v922_v31  ;;  %v4301_v37 = vpack.c.bf16 %v923_v36, %v921_v35  ;;  %v928_v39 = vld [vmem:[#allocation9 + $0x98] sm:$0xff]  ;;  %v925_v41 = vld [vmem:[#allocation9 + $0x80] sm:$0xff]  ;;  %v930_v44 = vld [vmem:[#allocation9 + $0xa8] sm:$0xff]  ;;  %p4657_p9 = pneg %p4656_p5 }
  0x8d   : > { %4290 = vmatpush1.bf16.msra.mxu0 %v4289_v18  ;;  %1005 = vmatprep.mubr.f32.mxu0 %v4751_v1  ;;  %v4303_v40 = vpack.c.bf16 %v928_v39, %v926_v38  ;;  %v4305_v43 = vpack.c.bf16 %v927_v42, %v925_v41  ;;  %v932_v45 = vld [vmem:[#allocation9 + $0xb8] sm:$0xff]  ;;  %v929_v47 = vld [vmem:[#allocation9 + $0xa0] sm:$0xff]  ;;  %v931_v48 = vld [vmem:[#allocation9 + $0xb0] sm:$0xff] }
  0x8e   : > { %4292 = vmatprep.subr.bf16.mxu0 %v4291_v21  ;;  %1126 = vmatprep.mubr.f32.mxu1 %v4751_v1  ;;  %v4307_v46 = vpack.c.bf16 %v932_v45, %v930_v44  ;;  %v4309_v49 = vpack.c.bf16 %v931_v48, %v929_v47  ;;  %v934_v50 = vld [vmem:[#allocation9 + $0xc8] sm:$0xff]  ;;  %v936_v51 = vld [vmem:[#allocation9 + $0xd8] sm:$0xff]  ;;  %v933_v53 = vld [vmem:[#allocation9 + $0xc0] sm:$0xff] }
  0x8f   : > { %v4311_v52 = vpack.c.bf16 %v936_v51, %v934_v50  ;;  %v935_v54 = vld [vmem:[#allocation9 + $0xd0] sm:$0xff]  ;;  %v938_v56 = vld [vmem:[#allocation9 + $0xe8] sm:$0xff]  ;;  %v940_v57 = vld [vmem:[#allocation9 + $0xf8] sm:$0xff] }
  0x90   : > { %2290 = vperm.xlu0 %4404, %v2287_v26   ;;  %v4313_v55 = vpack.c.bf16 %v935_v54, %v933_v53  ;;  %v4315_v58 = vpack.c.bf16 %v940_v57, %v938_v56  ;;  %v937_v59 = vld [vmem:[#allocation9 + $0xe0] sm:$0xff]  ;;  %v939_v60 = vld [vmem:[#allocation9 + $0xf0] sm:$0xff]  ;;  %v2255_v62 = vld [vmem:[%s5001_s21 + $0x8] sm:$0xff] }
  0x91   : > { %4294 = vmatpush1.bf16.msra.mxu0 %v4293_v27  ;;  %v4317_v61 = vpack.c.bf16 %v939_v60, %v937_v59  ;;  %v2254_v59 = vld [vmem:[%s5001_s21] sm:$0xff]  ;;  %v2257_v0 = vld [vmem:[%s5001_s21 + $0x18] sm:$0xff] }
  0x92   : > { %4296 = vmatprep.subr.bf16.mxu0 %v4295_v28  ;;  %v5053_v2 = vld [vmem:[%s5924_s6] sm:$0xff] }
  0x93   : > { %v2261_v4 = vld [vmem:[%s5001_s21 + $0x38] sm:$0xff] }
  0x95   : > { %4298 = vmatpush1.bf16.msra.mxu0 %v4297_v33 }
  0x96   : > { %4300 = vmatprep.subr.bf16.mxu0 %v4299_v34 }
  0x99   : > { %4302 = vmatpush1.bf16.msra.mxu0 %v4301_v37 }
  0x9a   : > { %4304 = vmatprep.subr.bf16.mxu0 %v4303_v40 }
  0x9d   : > { %4306 = vmatpush1.bf16.msra.mxu0 %v4305_v43 }
  0x9e   : > { %4308 = vmatprep.subr.bf16.mxu0 %v4307_v46 }
  0xa1   : > { %4310 = vmatpush1.bf16.msra.mxu0 %v4309_v49 }
  0xa2   : > { %4312 = vmatprep.subr.bf16.mxu0 %v4311_v52 }
  0xa5   : > { %4314 = vmatpush1.bf16.msra.mxu0 %v4313_v55 }
  0xa6   : > { %4316 = vmatprep.subr.bf16.mxu0 %v4315_v58 }
  0xa9   : > { %4318 = vmatpush1.bf16.msra.mxu0 %v4317_v61 }
  0xaa   : > { %2297 = vmatprep.subr.mxu0 %v2255_v62 }
 0x10b   : > { %v467_v3 = vpop.permute.xlu0 %466 }
 0x15a   : > { %v539_v6 = vpop.f32.mrb[0].mxu0  ;;  %v610_v7 = vpop.f32.mrb[0].mxu1 }
 0x15b   : > { %v540_v8 = vadd.f32 %v539_v6, %v467_v3  ;;  %v611_v9 = vadd.f32 %v610_v7, %v467_v3  ;;  %v541_v10 = vpop.f32.mrb[1].mxu0  ;;  %v612_v11 = vpop.f32.mrb[1].mxu1  ;;  %v2260_v6 = vld [vmem:[%s5001_s21 + $0x30] sm:$0xff]  ;;  %v2265_v7 = vld [vmem:[%s5001_s21 + $0x58] sm:$0xff] }
 0x15c   : > { %v542_v12 = vadd.f32 %v541_v10, %v467_v3  ;;  %v613_v14 = vadd.f32 %v612_v11, %v467_v3  ;;  %v2268_v10 = vld [vmem:[%s5001_s21 + $0x70] sm:$0xff]  ;;  %v2273_v11 = vld [vmem:[%s5001_s21 + $0x98] sm:$0xff] }
 0x15e   : > { %v765_v15 = vcombine.low %v540_v8, %v542_v12  ;;  %v766_v16 = vcombine.high %v540_v8, %v542_v12  ;;  %v767_v17 = vcombine.low %v611_v9, %v613_v14  ;;  %v768_v18 = vcombine.high %v611_v9, %v613_v14  ;;  %v681_v19 = vpop.f32.mrb[2].mxu0  ;;  %v752_v20 = vpop.f32.mrb[2].mxu1  ;;  %v2264_v8 = vld [vmem:[%s5001_s21 + $0x50] sm:$0xff]  ;;  %v2269_v9 = vld [vmem:[%s5001_s21 + $0x78] sm:$0xff] }
 0x15f   : > { %v682_v21 = vadd.f32 %v681_v19, %v467_v3  ;;  %v753_v22 = vadd.f32 %v752_v20, %v467_v3  ;;  %v683_v23 = vpop.f32.mrb[3].mxu0  ;;  %v754_v24 = vpop.f32.mrb[3].mxu1  ;;  %v2272_v12 = vld [vmem:[%s5001_s21 + $0x90] sm:$0xff]  ;;  %v3532_v19 = vld [vmem:[%s5926_s8] sm:$0xff] }
 0x160   : > { %v779_v25 = vrot.slane %v765_v15, %v778_v13  ;;  %v786_v26 = vrot.slane %v766_v16, %v778_v13  ;;  %v793_v27 = vrot.slane %v767_v17, %v778_v13  ;;  %v800_v28 = vrot.slane %v768_v18, %v778_v13  ;;  %v2276_v14 = vld [vmem:[%s5001_s21 + $0xb0] sm:$0xff]  ;;  %v2281_v15 = vld [vmem:[%s5001_s21 + $0xd8] sm:$0xff]  ;;  %3535 = vperm.xlu1 %4405, %v3532_v19  }
 0x161   : > { %v684_v29 = vadd.f32 %v683_v23, %v467_v3  ;;  %v755_v30 = vadd.f32 %v754_v24, %v467_v3  ;;  %v2256_v3 = vld [vmem:[%s5001_s21 + $0x10] sm:$0xff]  ;;  %v2285_v17 = vld [vmem:[%s5001_s21 + $0xf8] sm:$0xff] }
 0x162   : > { %v829_v31 = vcombine.low %v779_v25, %v793_v27  ;;  %v830_v32 = vcombine.high %v779_v25, %v793_v27  ;;  %v831_v33 = vcombine.low %v786_v26, %v800_v28  ;;  %v832_v34 = vcombine.high %v786_v26, %v800_v28  ;;  %v2280_v16 = vld [vmem:[%s5001_s21 + $0xd0] sm:$0xff]  ;;  %v3762_v20 = vld [vmem:[#allocation3] sm:$0x1]  ;;  %v5110_v26 = vld [vmem:[%s5920_s2 + $0x8] sm:$0xff] }
 0x163   : > { %v769_v35 = vcombine.low %v682_v21, %v684_v29  ;;  %v770_v36 = vcombine.high %v682_v21, %v684_v29  ;;  %v771_v37 = vcombine.low %v753_v22, %v755_v30  ;;  %v772_v38 = vcombine.high %v753_v22, %v755_v30  ;;  %v2284_v18 = vld [vmem:[%s5001_s21 + $0xf0] sm:$0xff]  ;;  %v5102_v23 = vld [vmem:[%s5920_s2] sm:$0xff] }
 0x164   : > { %v843_v47 = vrot.slane %v829_v31, %v778_v13  ;;  %v857_v48 = vrot.slane %v830_v32, %v778_v13  ;;  %v850_v53 = vrot.slane %v831_v33, %v778_v13  ;;  %v864_v54 = vrot.slane %v832_v34, %v778_v13  ;;  %3765 = vperm.xlu1 %4405, %v3762_v20  }
 0x165   : > { %v807_v39 = vrot.slane %v769_v35, %v778_v13  ;;  %v814_v40 = vrot.slane %v770_v36, %v778_v13  ;;  %v821_v41 = vrot.slane %v771_v37, %v778_v13  ;;  %v828_v42 = vrot.slane %v772_v38, %v778_v13 }
 0x167   : > { %v833_v43 = vcombine.low %v807_v39, %v821_v41  ;;  %v834_v44 = vcombine.high %v807_v39, %v821_v41  ;;  %v835_v45 = vcombine.low %v814_v40, %v828_v42  ;;  %v836_v46 = vcombine.high %v814_v40, %v828_v42 }
 0x169   : > { %v871_v49 = vrot.slane %v833_v43, %v778_v13  ;;  %v885_v50 = vrot.slane %v834_v44, %v778_v13  ;;  %v878_v51 = vrot.slane %v835_v45, %v778_v13  ;;  %v892_v52 = vrot.slane %v836_v46, %v778_v13  ;;  %v2277_v13 = vld [vmem:[%s5001_s21 + $0xb8] sm:$0xff] }
 0x16b   : > { %v893_v55 = vcombine.low %v843_v47, %v871_v49  ;;  %v897_v56 = vcombine.low %v857_v48, %v885_v50  ;;  %v894_v57 = vcombine.high %v843_v47, %v871_v49  ;;  %v898_v58 = vcombine.high %v857_v48, %v885_v50  ;;  %v2259_v49 = vld [vmem:[%s5001_s21 + $0x28] sm:$0xff] }
 0x16c   : > { %v895_v60 = vcombine.low %v850_v53, %v878_v51  ;;  %v899_v61 = vcombine.low %v864_v54, %v892_v52  ;;  %v896_v62 = vcombine.high %v850_v53, %v878_v51  ;;  %v900_v63 = vcombine.high %v864_v54, %v892_v52  ;;  %v2258_v54 = vld [vmem:[%s5001_s21 + $0x20] sm:$0xff] }
 0x16d   : > { %1006 = vmatmul.mubr.f32.vlgmr.msra.gmra.mrb[4].mxu0 %v893_v55  ;;  %v2263_v55 = vld [vmem:[%s5001_s21 + $0x48] sm:$0xff] }
 0x16e   : > { %1011 = vmatprep.mubr.f32.mxu0 %v4751_v1  ;;  %2298 = vmatpush1.msra.mxu0 %v2254_v59 }
 0x16f   : > { %2368 = vmatprep.subr.mxu0 %v2257_v0  ;;  %v2270_v0 = vld [vmem:[%s5001_s21 + $0x80] sm:$0xff] }
 0x171   : > { %1012 = vmatmul.mubr.f32.gmra.mrb[6].mxu0 %v897_v56 }
 0x172   : > { %1017 = vmatprep.mubr.f32.mxu0 %v4751_v1 }
 0x175   : > { %1018 = vmatmul.mubr.f32.gmra.mrb[8].mxu0 %v894_v57 }
 0x176   : > { %1023 = vmatprep.mubr.f32.mxu0 %v4751_v1 }
 0x179   : > { %1024 = vmatmul.mubr.f32.gmra.mrb[10].mxu0 %v898_v58 }
 0x17a   : > { %1029 = vmatprep.mubr.f32.mxu0 %v4751_v1 }
 0x17d   : > { %1030 = vmatmul.mubr.f32.gmra.mrb[12].mxu0 %v895_v60  ;;  %v2262_v60 = vld [vmem:[%s5001_s21 + $0x40] sm:$0xff] }
 0x17e   : > { %1035 = vmatprep.mubr.f32.mxu0 %v4751_v1 }
 0x181   : > { %1036 = vmatmul.mubr.f32.gmra.mrb[14].mxu0 %v899_v61  ;;  %v2267_v61 = vld [vmem:[%s5001_s21 + $0x68] sm:$0xff] }
 0x182   : > { %1041 = vmatprep.mubr.f32.mxu0 %v4751_v1 }
 0x185   : > { %1042 = vmatmul.mubr.f32.gmra.mrb[16].mxu0 %v896_v62  ;;  %v2266_v62 = vld [vmem:[%s5001_s21 + $0x60] sm:$0xff] }
 0x186   : > { %1047 = vmatprep.mubr.f32.mxu0 %v4751_v1 }
 0x189   : > { %1048 = vmatmul.mubr.f32.gmra.mrb[18].mxu0 %v900_v63  ;;  %v2271_v63 = vld [vmem:[%s5001_s21 + $0x88] sm:$0xff] }
 0x18a   : > { %2361 = vmatprep.mubr.f32.mxu0 %v4751_v1 }
 0x18d   : > { %4231 = vmatmul.mubr.msk.f32.vlgmr.msra.gmra.mrb[20].mxu0 %vm469_vm0, %v5053_v2 }
 0x18e   : > { %2369 = vmatpush1.msra.mxu0 %v2256_v3  ;;  %2432 = vmatprep.mubr.f32.mxu0 %v4751_v1  ;;  %v2275_v3 = vld [vmem:[%s5001_s21 + $0xa8] sm:$0xff] }
 0x18f   : > { %2510 = vmatprep.subr.mxu0 %v2261_v4  ;;  %v2274_v4 = vld [vmem:[%s5001_s21 + $0xa0] sm:$0xff] }
 0x191   : > { %4232 = vmatmul.mubr.msk.f32.vlgmr.msra.gmra.mrb[22].mxu0 %vm469_vm0, %v5053_v2 }
 0x192   : > { %2511 = vmatpush1.msra.mxu0 %v2260_v6  ;;  %2574 = vmatprep.mubr.f32.mxu0 %v4751_v1  ;;  %v2279_v6 = vld [vmem:[%s5001_s21 + $0xc8] sm:$0xff] }
 0x193   : > { %2652 = vmatprep.subr.mxu0 %v2265_v7  ;;  %v2278_v7 = vld [vmem:[%s5001_s21 + $0xc0] sm:$0xff] }
 0x195   : > { %4234 = vmatmul.mubr.msk.f32.vlgmr.msra.gmra.mrb[24].mxu0 %vm469_vm0, %v5053_v2 }
 0x196   : > { %2653 = vmatpush1.msra.mxu0 %v2264_v8  ;;  %2716 = vmatprep.mubr.f32.mxu0 %v4751_v1  ;;  %v2283_v8 = vld [vmem:[%s5001_s21 + $0xe8] sm:$0xff] }
 0x197   : > { %2794 = vmatprep.subr.mxu0 %v2269_v9  ;;  %v2282_v9 = vld [vmem:[%s5001_s21 + $0xe0] sm:$0xff] }
 0x199   : > { %4236 = vmatmul.mubr.msk.f32.vlgmr.msra.gmra.mrb[26].mxu0 %vm469_vm0, %v5053_v2 }
 0x19a   : > { %2795 = vmatpush1.msra.mxu0 %v2268_v10  ;;  %2858 = vmatprep.mubr.f32.mxu0 %v4751_v1 }
 0x19b   : > { %2936 = vmatprep.subr.mxu0 %v2273_v11 }
 0x19d   : > { %4238 = vmatmul.mubr.msk.f32.vlgmr.msra.gmra.mrb[28].mxu0 %vm469_vm0, %v5053_v2 }
 0x19e   : > { %2937 = vmatpush1.msra.mxu0 %v2272_v12  ;;  %3000 = vmatprep.mubr.f32.mxu0 %v4751_v1 }
 0x19f   : > { %3078 = vmatprep.subr.mxu0 %v2277_v13 }
 0x1a1   : > { %4240 = vmatmul.mubr.msk.f32.vlgmr.msra.gmra.mrb[30].mxu0 %vm469_vm0, %v5053_v2 }
 0x1a2   : > { %3079 = vmatpush1.msra.mxu0 %v2276_v14  ;;  %3142 = vmatprep.mubr.f32.mxu0 %v4751_v1  ;;  %v4754_v14 = vmov 1983009808  }
 0x1a3   : > { %3220 = vmatprep.subr.mxu0 %v2281_v15  ;;  %v1681_v15 = vunpack.c.l.s4 %v4754_v14 }
 0x1a5   : > { %4242 = vmatmul.mubr.msk.f32.vlgmr.msra.gmra.mrb[32].mxu0 %vm469_vm0, %v5053_v2 }
 0x1a6   : > { %3221 = vmatpush1.msra.mxu0 %v2280_v16  ;;  %3284 = vmatprep.mubr.f32.mxu0 %v4751_v1 }
 0x1a7   : > { %3362 = vmatprep.subr.mxu0 %v2285_v17 }
 0x1a9   : > { %4244 = vmatmul.mubr.msk.f32.vlgmr.msra.gmra.mrb[34].mxu0 %vm469_vm0, %v5053_v2 }
 0x1aa   : > { %3363 = vmatpush1.msra.mxu0 %v2284_v18  ;;  %3426 = vmatprep.mubr.f32.mxu0 %v4751_v1  ;;  %v1682_v18 = vunpack.c.0.s8 %v1681_v15 }
 0x1ad   : > { %4246 = vmatmul.mubr.msk.f32.vlgmr.msra.gmra.mrb[36].mxu0 %vm469_vm0, %v5053_v2 }
 0x240   : > { %v1007_v21 = vpop.f32.mrb[4].mxu0 }
 0x241   : > { %v1009_v22 = vpop.f32.mrb[5].mxu0 }
 0x242   : > { %1062 = vmatprep.subr.mxu1 %v1009_v22 }
 0x243   : > { %1063 = vmatpush1.msra.mxu1 %v1007_v21  ;;  %v5228_v21 = vsub.s32 %v1682_v18, %v5037_v5 }
 0x244   : > { %v1013_v24 = vpop.f32.mrb[6].mxu0  ;;  %4215 = vmatmul.mubr.msk.f32.vlgmr.msra.gmra.mrb[4].mxu1 %vm469_vm0, %v5102_v23 }
 0x245   : > { %v1015_v25 = vpop.f32.mrb[7].mxu0  ;;  %1132 = vmatprep.mubr.f32.mxu1 %v4751_v1 }
 0x246   : > { %1139 = vmatprep.subr.mxu1 %v1015_v25 }
 0x247   : > { %1140 = vmatpush1.msra.mxu1 %v1013_v24 }
 0x248   : > { %v1019_v27 = vpop.f32.mrb[8].mxu0  ;;  %4216 = vmatmul.mubr.msk.f32.gmra.mrb[6].mxu1 %vm469_vm0, %v5110_v26 }
 0x249   : > { %v1021_v28 = vpop.f32.mrb[9].mxu0  ;;  %1203 = vmatprep.mubr.f32.mxu1 %v4751_v1 }
 0x24a   : > { %1216 = vmatprep.subr.mxu1 %v1021_v28 }
 0x24c   : > { %v1025_v29 = vpop.f32.mrb[10].mxu0  ;;  %4217 = vmatmul.mubr.msk.f32.vlgmr.msra.gmra.mrb[8].mxu1 %vm469_vm0, %v5102_v23 }
 0x24d   : > { %1217 = vmatpush1.msra.mxu1 %v1019_v27  ;;  %v1027_v30 = vpop.f32.mrb[11].mxu0  ;;  %1209 = vmatprep.mubr.f32.mxu1 %v4751_v1 }
 0x24e   : > { %1293 = vmatprep.subr.mxu1 %v1027_v30 }
 0x250   : > { %v1031_v31 = vpop.f32.mrb[12].mxu0  ;;  %4218 = vmatmul.mubr.msk.f32.gmra.mrb[10].mxu1 %vm469_vm0, %v5110_v26 }
 0x251   : > { %v1033_v32 = vpop.f32.mrb[13].mxu0  ;;  %1280 = vmatprep.mubr.f32.mxu1 %v4751_v1 }
 0x254   : > { %v1037_v33 = vpop.f32.mrb[14].mxu0  ;;  %4219 = vmatmul.mubr.msk.f32.vlgmr.msra.gmra.mrb[12].mxu1 %vm469_vm0, %v5102_v23 }
 0x255   : > { %1294 = vmatpush1.msra.mxu1 %v1025_v29  ;;  %v1039_v34 = vpop.f32.mrb[15].mxu0  ;;  %1286 = vmatprep.mubr.f32.mxu1 %v4751_v1 }
 0x256   : > { %1370 = vmatprep.subr.mxu1 %v1033_v32 }
 0x258   : > { %v1043_v35 = vpop.f32.mrb[16].mxu0  ;;  %4220 = vmatmul.mubr.msk.f32.gmra.mrb[14].mxu1 %vm469_vm0, %v5110_v26 }
 0x259   : > { %v1045_v36 = vpop.f32.mrb[17].mxu0  ;;  %1357 = vmatprep.mubr.f32.mxu1 %v4751_v1 }
 0x25c   : > { %v1049_v37 = vpop.f32.mrb[18].mxu0  ;;  %4221 = vmatmul.mubr.msk.f32.vlgmr.msra.gmra.mrb[16].mxu1 %vm469_vm0, %v5102_v23 }
 0x25d   : > { %1371 = vmatpush1.msra.mxu1 %v1031_v31  ;;  %v1051_v38 = vpop.f32.mrb[19].mxu0  ;;  %1363 = vmatprep.mubr.f32.mxu1 %v4751_v1 }
 0x25e   : > { %1447 = vmatprep.subr.mxu1 %v1039_v34 }
 0x260   : > { %4222 = vmatmul.mubr.msk.f32.gmra.mrb[18].mxu1 %vm469_vm0, %v5110_v26  ;;  %v5132_v39 = vpop.f32.mrb[20].mxu0 }
 0x261   : > { %v5134_v40 = vpop.f32.mrb[21].mxu0  ;;  %1434 = vmatprep.mubr.f32.mxu1 %v4751_v1 }
 0x264   : > { %4223 = vmatmul.mubr.msk.f32.vlgmr.msra.gmra.mrb[20].mxu1 %vm469_vm0, %v5102_v23  ;;  %v5139_v41 = vpop.f32.mrb[22].mxu0 }
 0x265   : > { %1448 = vmatpush1.msra.mxu1 %v1037_v33  ;;  %v5141_v42 = vpop.f32.mrb[23].mxu0  ;;  %1440 = vmatprep.mubr.f32.mxu1 %v4751_v1 }
 0x266   : > { %1524 = vmatprep.subr.mxu1 %v1045_v36 }
 0x268   : > { %4224 = vmatmul.mubr.msk.f32.gmra.mrb[22].mxu1 %vm469_vm0, %v5110_v26  ;;  %v5146_v43 = vpop.f32.mrb[24].mxu0 }
 0x269   : > { %v5148_v44 = vpop.f32.mrb[25].mxu0  ;;  %1511 = vmatprep.mubr.f32.mxu1 %v4751_v1 }
 0x26c   : > { %4225 = vmatmul.mubr.msk.f32.vlgmr.msra.gmra.mrb[24].mxu1 %vm469_vm0, %v5102_v23  ;;  %v5153_v45 = vpop.f32.mrb[26].mxu0 }
 0x26d   : > { %1525 = vmatpush1.msra.mxu1 %v1043_v35  ;;  %v5155_v46 = vpop.f32.mrb[27].mxu0  ;;  %1517 = vmatprep.mubr.f32.mxu1 %v4751_v1 }
 0x26e   : > { %1601 = vmatprep.subr.mxu1 %v1051_v38 }
 0x270   : > { %4226 = vmatmul.mubr.msk.f32.gmra.mrb[26].mxu1 %vm469_vm0, %v5110_v26  ;;  %v5160_v47 = vpop.f32.mrb[28].mxu0 }
 0x271   : > { %v5162_v48 = vpop.f32.mrb[29].mxu0  ;;  %1588 = vmatprep.mubr.f32.mxu1 %v4751_v1 }
 0x274   : > { %4227 = vmatmul.mubr.msk.f32.vlgmr.msra.gmra.mrb[28].mxu1 %vm469_vm0, %v5102_v23  ;;  %v5168_v50 = vpop.f32.mrb[30].mxu0 }
 0x275   : > { %1602 = vmatpush1.msra.mxu1 %v1049_v37  ;;  %v5170_v51 = vpop.f32.mrb[31].mxu0  ;;  %1594 = vmatprep.mubr.f32.mxu1 %v4751_v1 }
 0x276   : > { %2439 = vmatprep.subr.mxu1 %v2259_v49 }
 0x278   : > { %4228 = vmatmul.mubr.msk.f32.gmra.mrb[30].mxu1 %vm469_vm0, %v5110_v26  ;;  %v5175_v52 = vpop.f32.mrb[32].mxu0 }
 0x279   : > { %v5177_v53 = vpop.f32.mrb[33].mxu0  ;;  %1665 = vmatprep.mubr.f32.mxu1 %v4751_v1 }
 0x27c   : > { %4229 = vmatmul.mubr.msk.f32.vlgmr.msra.gmra.mrb[32].mxu1 %vm469_vm0, %v5102_v23  ;;  %v5184_v56 = vpop.f32.mrb[34].mxu0 }
 0x27d   : > { %5972 = vst [vmem:[#allocation20_spill] sm:$0xff] %v5184_v56  ;;  %v5186_v57 = vpop.f32.mrb[35].mxu0  ;;  %1671 = vmatprep.mubr.f32.mxu1 %v4751_v1  ;;  %2440 = vmatpush1.msra.mxu1 %v2258_v54 }
 0x27e   : > { %5973 = vst [vmem:[#allocation21_spill] sm:$0xff] %v5186_v57  ;;  %2581 = vmatprep.subr.mxu1 %v2263_v55 }
 0x280   : > { %4230 = vmatmul.mubr.msk.f32.gmra.mrb[34].mxu1 %vm469_vm0, %v5110_v26  ;;  %v5191_v58 = vpop.f32.mrb[36].mxu0  ;;  %v4755_v26 = vmov 1934713408  }
 0x281   : > { %5974 = vst [vmem:[#allocation22_spill] sm:$0xff] %v5191_v58  ;;  %v5193_v59 = vpop.f32.mrb[37].mxu0  ;;  %2503 = vmatprep.mubr.f32.mxu1 %v4751_v1  ;;  %v1745_v27 = vunpack.c.l.s4 %v4755_v26 }
 0x282   : > { %5975 = vst [vmem:[#allocation23_spill] sm:$0xff] %v5193_v59 }
 0x283   : > { %v1746_v38 = vunpack.c.0.s8 %v1745_v27 }
 0x284   : > { %4233 = vmatmul.mubr.msk.f32.vlgmr.msra.gmra.mrb[36].mxu1 %vm469_vm0, %v5053_v2 }
 0x285   : > { %2582 = vmatpush1.msra.mxu1 %v2262_v60  ;;  %2645 = vmatprep.mubr.f32.mxu1 %v4751_v1 }
 0x286   : > { %2723 = vmatprep.subr.mxu1 %v2267_v61 }
 0x288   : > { %4235 = vmatmul.mubr.msk.f32.vlgmr.msra.gmra.mrb[38].mxu1 %vm469_vm0, %v5053_v2 }
 0x289   : > { %2724 = vmatpush1.msra.mxu1 %v2266_v62  ;;  %2787 = vmatprep.mubr.f32.mxu1 %v4751_v1 }
 0x28a   : > { %2865 = vmatprep.subr.mxu1 %v2271_v63 }
 0x28c   : > { %4237 = vmatmul.mubr.msk.f32.vlgmr.msra.gmra.mrb[40].mxu1 %vm469_vm0, %v5053_v2 }
 0x28d   : > { %2866 = vmatpush1.msra.mxu1 %v2270_v0  ;;  %2929 = vmatprep.mubr.f32.mxu1 %v4751_v1 }
 0x28e   : > { %3007 = vmatprep.subr.mxu1 %v2275_v3 }
 0x290   : > { %4239 = vmatmul.mubr.msk.f32.vlgmr.msra.gmra.mrb[42].mxu1 %vm469_vm0, %v5053_v2 }
 0x291   : > { %3008 = vmatpush1.msra.mxu1 %v2274_v4  ;;  %3071 = vmatprep.mubr.f32.mxu1 %v4751_v1 }
 0x292   : > { %3149 = vmatprep.subr.mxu1 %v2279_v6  ;;  %v5239_v6 = vsub.s32 %v1746_v38, %v5037_v5 }
 0x294   : > { %4241 = vmatmul.mubr.msk.f32.vlgmr.msra.gmra.mrb[44].mxu1 %vm469_vm0, %v5053_v2 }
 0x295   : > { %3150 = vmatpush1.msra.mxu1 %v2278_v7  ;;  %3213 = vmatprep.mubr.f32.mxu1 %v4751_v1 }
 0x296   : > { %3291 = vmatprep.subr.mxu1 %v2283_v8 }
 0x298   : > { %4243 = vmatmul.mubr.msk.f32.vlgmr.msra.gmra.mrb[46].mxu1 %vm469_vm0, %v5053_v2 }
 0x299   : > { %3292 = vmatpush1.msra.mxu1 %v2282_v9  ;;  %3355 = vmatprep.mubr.f32.mxu1 %v4751_v1 }
 0x29c   : > { %4245 = vmatmul.mubr.msk.f32.vlgmr.msra.gmra.mrb[48].mxu1 %vm469_vm0, %v5053_v2 }
 0x317   : > { %v1128_v10 = vpop.f32.mrb[4].mxu1 }
 0x318   : > { %v1130_v11 = vpop.f32.mrb[5].mxu1 }
 0x31b   : > { %v1134_v12 = vpop.f32.mrb[6].mxu1 }
 0x31c   : > { %v1136_v13 = vpop.f32.mrb[7].mxu1 }
 0x31f   : > { %v1205_v16 = vpop.f32.mrb[8].mxu1 }
 0x320   : > { %v1207_v17 = vpop.f32.mrb[9].mxu1 }
 0x323   : > { %v1211_v19 = vpop.f32.mrb[10].mxu1 }
 0x324   : > { %v1213_v20 = vpop.f32.mrb[11].mxu1 }
 0x327   : > { %v1282_v22 = vpop.f32.mrb[12].mxu1 }
 0x328   : > { %v1678_v23 = vcombine.low %v1128_v10, %v1282_v22  ;;  %v1679_v1 = vcombine.high %v1128_v10, %v1282_v22  ;;  %v1284_v24 = vpop.f32.mrb[13].mxu1 }
 0x329   : > { %v1950_v25 = vcombine.low %v1130_v11, %v1284_v24  ;;  %v1951_v2 = vcombine.high %v1130_v11, %v1284_v24 }
 0x32a   : > { %v1686_v28 = vrot.slane %v1678_v23, %v5228_v21  ;;  %v1693_v29 = vrot.slane %v1679_v1, %v5228_v21 }
 0x32b   : > { %v1958_v30 = vrot.slane %v1950_v25, %v5228_v21  ;;  %v1965_v31 = vrot.slane %v1951_v2, %v5228_v21  ;;  %v1288_v32 = vpop.f32.mrb[14].mxu1 }
 0x32c   : > { %v1814_v33 = vcombine.low %v1134_v12, %v1288_v32  ;;  %v1815_v34 = vcombine.high %v1134_v12, %v1288_v32  ;;  %v1290_v35 = vpop.f32.mrb[15].mxu1 }
 0x32d   : > { %v2086_v36 = vcombine.low %v1136_v13, %v1290_v35  ;;  %v2087_v37 = vcombine.high %v1136_v13, %v1290_v35 }
 0x32e   : > { %v1822_v49 = vrot.slane %v1814_v33, %v5228_v21  ;;  %v1829_v54 = vrot.slane %v1815_v34, %v5228_v21 }
 0x32f   : > { %v2094_v55 = vrot.slane %v2086_v36, %v5228_v21  ;;  %v2101_v60 = vrot.slane %v2087_v37, %v5228_v21  ;;  %v1359_v61 = vpop.f32.mrb[16].mxu1 }
 0x330   : > { %v1694_v62 = vcombine.low %v1205_v16, %v1359_v61  ;;  %v1695_v63 = vcombine.high %v1205_v16, %v1359_v61  ;;  %v1361_v0 = vpop.f32.mrb[17].mxu1 }
 0x331   : > { %v1966_v3 = vcombine.low %v1207_v17, %v1361_v0  ;;  %v1967_v4 = vcombine.high %v1207_v17, %v1361_v0 }
 0x332   : > { %v1702_v7 = vrot.slane %v1694_v62, %v5228_v21  ;;  %v1709_v8 = vrot.slane %v1695_v63, %v5228_v21 }
 0x333   : > { %v1974_v9 = vrot.slane %v1966_v3, %v5228_v21  ;;  %v1981_v10 = vrot.slane %v1967_v4, %v5228_v21  ;;  %v1365_v11 = vpop.f32.mrb[18].mxu1 }
 0x334   : > { %v1742_v12 = vcombine.low %v1686_v28, %v1702_v7  ;;  %v1743_v13 = vcombine.high %v1686_v28, %v1702_v7  ;;  %v1758_v14 = vcombine.low %v1693_v29, %v1709_v8  ;;  %v1759_v15 = vcombine.high %v1693_v29, %v1709_v8  ;;  %v1367_v16 = vpop.f32.mrb[19].mxu1 }
 0x335   : > { %v2014_v18 = vcombine.low %v1958_v30, %v1974_v9  ;;  %v2015_v22 = vcombine.high %v1958_v30, %v1974_v9  ;;  %v2030_v17 = vcombine.low %v1965_v31, %v1981_v10  ;;  %v2031_v23 = vcombine.high %v1965_v31, %v1981_v10 }
 0x336   : > { %v5246_v1 = vrot.slane %v1742_v12, %v5239_v6  ;;  %v1830_v24 = vcombine.low %v1211_v19, %v1365_v11  ;;  %v1831_v25 = vcombine.high %v1211_v19, %v1365_v11  ;;  %v2102_v2 = vcombine.low %v1213_v20, %v1367_v16 }
 0x337   : > { %v5249_v26 = vrot.slane %v2014_v18, %v5239_v6  ;;  %v2103_v27 = vcombine.high %v1213_v20, %v1367_v16  ;;  %v1436_v32 = vpop.f32.mrb[20].mxu1  ;;  %v5252_v28 = vrot.slane %v1743_v13, %v5239_v6  ;;  %v5255_v29 = vrot.slane %v2015_v22, %v5239_v6 }
 0x338   : > { %v1838_v30 = vrot.slane %v1830_v24, %v5228_v21  ;;  %v1845_v31 = vrot.slane %v1831_v25, %v5228_v21  ;;  %v2110_v33 = vrot.slane %v2102_v2, %v5228_v21  ;;  %v1438_v34 = vpop.f32.mrb[21].mxu1  ;;  %v5261_v19 = vrot.slane %v1758_v14, %v5239_v6 }
 0x339   : > { %v2117_v35 = vrot.slane %v2103_v27, %v5228_v21  ;;  %v5265_v20 = vrot.slane %v2030_v17, %v5239_v6  ;;  %v5268_v36 = vrot.slane %v1759_v15, %v5239_v6  ;;  %v5271_v37 = vrot.slane %v2031_v23, %v5239_v6 }
 0x33a   : > { %v1878_v38 = vcombine.low %v1822_v49, %v1838_v30  ;;  %v1879_v61 = vcombine.high %v1822_v49, %v1838_v30  ;;  %v1894_v62 = vcombine.low %v1829_v54, %v1845_v31  ;;  %v1895_v63 = vcombine.high %v1829_v54, %v1845_v31  ;;  %v5305_v31 = vpop.permute.xlu0 %2290 }
 0x33b   : > { %v2150_v0 = vcombine.low %v2094_v55, %v2110_v33  ;;  %v2151_v3 = vcombine.high %v2094_v55, %v2110_v33  ;;  %v2166_v4 = vcombine.low %v2101_v60, %v2117_v35  ;;  %v2167_v7 = vcombine.high %v2101_v60, %v2117_v35  ;;  %v1442_v8 = vpop.f32.mrb[22].mxu1 }
 0x33c   : > { %v1444_v9 = vpop.f32.mrb[23].mxu1  ;;  %v5274_v10 = vrot.slane %v1878_v38, %v5239_v6  ;;  %v5277_v11 = vrot.slane %v1879_v61, %v5239_v6  ;;  %v5280_v12 = vrot.slane %v1894_v62, %v5239_v6  ;;  %v5283_v13 = vrot.slane %v1895_v63, %v5239_v6 }
 0x33d   : > { %v5286_v49 = vrot.slane %v2150_v0, %v5239_v6  ;;  %v5289_v54 = vrot.slane %v2151_v3, %v5239_v6  ;;  %v5292_v55 = vrot.slane %v2166_v4, %v5239_v6  ;;  %v5295_v60 = vrot.slane %v2167_v7, %v5239_v6  ;;  %v5316_v0 = vpop.permute.xlu1 %3535 }
 0x33e   : > { %5976 = vst [vmem:[#allocation24_spill] sm:$0xff] %v5280_v12  ;;  %5977 = vst [vmem:[#allocation25_spill] sm:$0xff] %v5283_v13  ;;  %v3770_v61 = vsub.s32 0, %v5037_v5  ;;  %v5320_v3 = vadd.f32 %v5134_v40, %v5305_v31  ;;  %v2435_v4 = vadd.f32 %v5139_v41, %v5305_v31  ;;  %v2437_v5 = vadd.f32 %v5141_v42, %v5305_v31 }
 0x33f   : > { %5978 = vst [vmem:[#allocation26_spill] sm:$0xff] %v5292_v55  ;;  %5979 = vst [vmem:[#allocation27_spill] sm:$0xff] %v5295_v60  ;;  %v1513_v14 = vpop.f32.mrb[24].mxu1  ;;  %v5338_v40 = vadd.f32 %v5148_v44, %v5305_v31  ;;  %v5342_v41 = vadd.f32 %v5153_v45, %v5305_v31 }
 0x340   : > { %v1515_v15 = vpop.f32.mrb[25].mxu1 }
 0x341   : > { %v3766_v45 = vpop.permute.xlu1 %3765 }
 0x343   : > { %v5297_v16 = vpop.f32.mrb[26].mxu1 }
 0x344   : > { %v5299_v18 = vpop.f32.mrb[27].mxu1 }
 0x347   : > { %v1590_v22 = vpop.f32.mrb[28].mxu1 }
 0x348   : > { %v1710_v17 = vcombine.low %v1436_v32, %v1590_v22  ;;  %v1711_v23 = vcombine.high %v1436_v32, %v1590_v22  ;;  %v1592_v24 = vpop.f32.mrb[29].mxu1  ;;  %v5314_v32 = vadd.f32 %v5132_v39, %v5305_v31  ;;  %v5328_v39 = vadd.f32 %v5146_v43, %v5305_v31 }
 0x349   : > { %v1982_v25 = vcombine.low %v1438_v34, %v1592_v24  ;;  %v1983_v2 = vcombine.high %v1438_v34, %v1592_v24  ;;  %v5356_v24 = vadd.f32 %v5160_v47, %v5305_v31  ;;  %v5372_v47 = vadd.f32 %v5175_v52, %v5305_v31 }
 0x34a   : > { %v1718_v27 = vrot.slane %v1710_v17, %v5228_v21  ;;  %v5303_v30 = vrot.slane %v1711_v23, %v5228_v21  ;;  %v5352_v23 = vadd.f32 %v5155_v46, %v5305_v31  ;;  %v5368_v46 = vadd.f32 %v5170_v51, %v5305_v31 }
 0x34b   : > { %v1990_v33 = vrot.slane %v1982_v25, %v5228_v21  ;;  %v5309_v35 = vrot.slane %v1983_v2, %v5228_v21  ;;  %v1596_v38 = vpop.f32.mrb[30].mxu1 }
 0x34c   : > { %v1846_v34 = vcombine.low %v1442_v8, %v1596_v38  ;;  %v1847_v62 = vcombine.high %v1442_v8, %v1596_v38  ;;  %v1598_v63 = vpop.f32.mrb[31].mxu1  ;;  %v5360_v38 = vadd.f32 %v5162_v48, %v5305_v31  ;;  %v5380_v48 = vadd.f32 %v5177_v53, %v5305_v31 }
 0x34d   : > { %v2118_v7 = vcombine.low %v1444_v9, %v1598_v63  ;;  %v2119_v22 = vcombine.high %v1444_v9, %v1598_v63 }
 0x34e   : > { %v5331_v8 = vrot.slane %v1846_v34, %v5228_v21  ;;  %v5334_v17 = vrot.slane %v1847_v62, %v5228_v21  ;;  %v5364_v34 = vadd.f32 %v5168_v50, %v5305_v31  ;;  %5982 = vst [vmem:[#allocation30_spill] sm:$0xff] %v5380_v48 }
 0x34f   : > { %v5345_v42 = vrot.slane %v2118_v7, %v5228_v21  ;;  %v5348_v43 = vrot.slane %v2119_v22, %v5228_v21  ;;  %v1667_v9 = vpop.f32.mrb[32].mxu1  ;;  %v5386_v22 = vrot.slane %v3766_v45, %v3770_v61 }
 0x350   : > { %5980 = vst [vmem:[#allocation28_spill] sm:$0xff] %v5334_v17  ;;  %v1726_v44 = vcombine.low %v1513_v14, %v1667_v9  ;;  %v1727_v25 = vcombine.high %v1513_v14, %v1667_v9  ;;  %v1669_v2 = vpop.f32.mrb[33].mxu1 }
 0x351   : > { %5981 = vst [vmem:[#allocation29_spill] sm:$0xff] %v5348_v43  ;;  %v1998_v62 = vcombine.low %v1515_v15, %v1669_v2  ;;  %v1999_v63 = vcombine.high %v1515_v15, %v1669_v2  ;;  %5983 = vst [vmem:[#allocation31_spill] sm:$0xff] %v5386_v22 }
 0x352   : > { %v1734_v14 = vrot.slane %v1726_v44, %v5228_v21  ;;  %v5376_v7 = vrot.slane %v1727_v25, %v5228_v21 }
 0x353   : > { %v2006_v50 = vrot.slane %v1998_v62, %v5228_v21  ;;  %v5384_v15 = vrot.slane %v1999_v63, %v5228_v21  ;;  %v1673_v51 = vpop.f32.mrb[34].mxu1 }
 0x354   : > { %v1774_v9 = vcombine.low %v1718_v27, %v1734_v14  ;;  %v1775_v52 = vcombine.high %v1718_v27, %v1734_v14  ;;  %v1790_v44 = vcombine.low %v5303_v30, %v5376_v7  ;;  %v1675_v2 = vpop.f32.mrb[35].mxu1  ;;  %v1862_v45 = vcombine.low %v5297_v16, %v1673_v51 }
 0x355   : > { %v2046_v60 = vcombine.low %v1990_v33, %v2006_v50  ;;  %v2047_v53 = vcombine.high %v1990_v33, %v2006_v50  ;;  %v2062_v62 = vcombine.low %v5309_v35, %v5384_v15  ;;  %v1863_v27 = vcombine.high %v5297_v16, %v1673_v51 }
 0x356   : > { %v1782_v61 = vrot.slane %v1774_v9, %v5239_v6  ;;  %v2134_v14 = vcombine.low %v5299_v18, %v1675_v2  ;;  %v2135_v25 = vcombine.high %v5299_v18, %v1675_v2  ;;  %v1789_v33 = vrot.slane %v1775_v52, %v5239_v6 }
 0x357   : > { %v2054_v59 = vrot.slane %v2046_v60, %v5239_v6  ;;  %v2505_v50 = vpop.f32.mrb[36].mxu1  ;;  %v2061_v13 = vrot.slane %v2047_v53, %v5239_v6  ;;  %v5407_v9 = vrot.slane %v1862_v45, %v5228_v21  ;;  %v5410_v16 = vrot.slane %v1863_v27, %v5228_v21 }
 0x358   : > { %v1806_v55 = vcombine.low %v5246_v1, %v1782_v61  ;;  %v1807_v63 = vcombine.high %v5246_v1, %v1782_v61  ;;  %v2507_v51 = vpop.f32.mrb[37].mxu1  ;;  %v5415_v52 = vrot.slane %v2134_v14, %v5228_v21  ;;  %v5418_v2 = vrot.slane %v2135_v25, %v5228_v21 }
 0x359   : > { %5984 = vst [vmem:[#allocation32_spill] sm:$0xff] %v5410_v16  ;;  %v2078_v60 = vcombine.low %v5249_v26, %v2054_v59  ;;  %v2079_v18 = vcombine.high %v5249_v26, %v2054_v59  ;;  %v2081_v26 = vcombine.high %v5255_v29, %v2061_v13  ;;  %v2508_v59 = vadd.f32 %v2507_v51, %v5305_v31 }
 0x35a   : > { %5985 = vst [vmem:[#allocation33_spill] sm:$0xff] %v5418_v2  ;;  %v3468_v53 = vadd.f32 %v5314_v32, %v1806_v55  ;;  %v3470_v1 = vadd.f32 %v2435_v4, %v1807_v63  ;;  %v2070_v55 = vrot.slane %v2062_v62, %v5239_v6 }
 0x35b   : > { %v3469_v27 = vadd.f32 %v5320_v3, %v2078_v60  ;;  %v3471_v58 = vadd.f32 %v2437_v5, %v2079_v18  ;;  %v2647_v21 = vpop.f32.mrb[38].mxu1  ;;  %v1808_v60 = vcombine.low %v5252_v28, %v1789_v33  ;;  %v1809_v18 = vcombine.high %v5252_v28, %v1789_v33 }
 0x35c   : > { %v3500_v25 = vmax.f32 %v3468_v53, 0.0  ;;  %v3502_v14 = vmax.f32 %v3470_v1, 0.0  ;;  %v2649_v4 = vpop.f32.mrb[39].mxu1  ;;  %v2506_v53 = vadd.f32 %v2505_v50, %v5305_v31  ;;  %v2080_v1 = vcombine.low %v5255_v29, %v2061_v13 }
 0x35d   : > { %v3501_v63 = vmax.f32 %v3469_v27, 0.0  ;;  %v3503_v45 = vmax.f32 %v3471_v58, 0.0  ;;  %v1798_v58 = vrot.slane %v1790_v44, %v5239_v6  ;;  %v2648_v27 = vadd.f32 %v2647_v21, %v5305_v31 }
 0x35e   : > { %v3472_v32 = vadd.f32 %v2506_v53, %v1808_v60  ;;  %v3474_v5 = vadd.f32 %v5328_v39, %v1809_v18  ;;  %v2650_v28 = vadd.f32 %v2649_v4, %v5305_v31  ;;  %v3473_v50 = vadd.f32 %v2508_v59, %v2080_v1 }
 0x35f   : > { %v5446_v3 = vpop.f32.mrb[40].mxu1  ;;  %v3475_v29 = vadd.f32 %v5338_v40, %v2081_v26  ;;  %v1810_v13 = vcombine.low %v5261_v19, %v1798_v58  ;;  %v1811_v44 = vcombine.high %v5261_v19, %v1798_v58  ;;  %v2082_v61 = vcombine.low %v5265_v20, %v2070_v55 }
 0x360   : > { %v5451_v33 = vpop.f32.mrb[41].mxu1  ;;  %v3504_v51 = vmax.f32 %v3472_v32, 0.0  ;;  %v3506_v21 = vmax.f32 %v3474_v5, 0.0  ;;  %v2083_v60 = vcombine.high %v5265_v20, %v2070_v55  ;;  %v3505_v39 = vmax.f32 %v3473_v50, 0.0 }
 0x361   : > { %v3507_v18 = vmax.f32 %v3475_v29, 0.0  ;;  %v3476_v62 = vadd.f32 %v2648_v27, %v1810_v13  ;;  %v3478_v4 = vadd.f32 %v5342_v41, %v1811_v44  ;;  %v3477_v59 = vadd.f32 %v2650_v28, %v2082_v61 }
 0x362   : > { %v3479_v40 = vadd.f32 %v5352_v23, %v2083_v60  ;;  %v3538_v26 = vmul.f32 %v5316_v0, %v3500_v25  ;;  %v3539_v19 = vmul.f32 %v5316_v0, %v3501_v63  ;;  %v3540_v20 = vmul.f32 %v5316_v0, %v3502_v14 }
 0x363   : > { %v5459_v53 = vpop.f32.mrb[42].mxu1  ;;  %v3508_v5 = vmax.f32 %v3476_v62, 0.0  ;;  %v3510_v1 = vmax.f32 %v3478_v4, 0.0  ;;  %v3541_v55 = vmul.f32 %v5316_v0, %v3503_v45  ;;  %v3509_v58 = vmax.f32 %v3477_v59, 0.0 }
 0x364   : > { %v5464_v32 = vpop.f32.mrb[43].mxu1  ;;  %v3511_v27 = vmax.f32 %v3479_v40, 0.0  ;;  %v3542_v41 = vmul.f32 %v5316_v0, %v3504_v51  ;;  %v3543_v61 = vmul.f32 %v5316_v0, %v3505_v39  ;;  %v3544_v23 = vmul.f32 %v5316_v0, %v3506_v21 }
 0x365   : > { %v3545_v25 = vmul.f32 %v5316_v0, %v3507_v18  ;;  %v5473_v63 = vmul.f32 %v5316_v0, %v3508_v5  ;;  %v5476_v28 = vmul.f32 %v5316_v0, %v3510_v1  ;;  %v3547_v45 = vmul.f32 %v5316_v0, %v3509_v58 }
 0x366   : > { %v5482_v14 = vmul.f32 %v5316_v0, %v3511_v27  ;;  %v3570_v29 = vrot.slane %v3538_v26, 4  ;;  %v3576_v13 = vrot.slane %v3539_v19, 4  ;;  %v3582_v51 = vrot.slane %v3540_v20, 4 }
 0x367   : > { %v5478_v50 = vpop.f32.mrb[44].mxu1  ;;  %v3588_v21 = vrot.slane %v3541_v55, 4  ;;  %v3594_v60 = vrot.slane %v3542_v41, 4  ;;  %v3600_v39 = vrot.slane %v3543_v61, 4  ;;  %v3606_v4 = vrot.slane %v3544_v23, 4 }
 0x368   : > { %v5484_v44 = vpop.f32.mrb[45].mxu1  ;;  %v3571_v18 = vadd.f32 %v3570_v29, %v3538_v26  ;;  %v3577_v62 = vadd.f32 %v3576_v13, %v3539_v19  ;;  %v3612_v59 = vrot.slane %v3545_v25, 4  ;;  %v3583_v40 = vadd.f32 %v3582_v51, %v3540_v20 }
 0x369   : > { %v3589_v5 = vadd.f32 %v3588_v21, %v3541_v55  ;;  %v3595_v1 = vadd.f32 %v3594_v60, %v3542_v41  ;;  %v3601_v57 = vadd.f32 %v3600_v39, %v3543_v61  ;;  %v3607_v43 = vadd.f32 %v3606_v4, %v3544_v23 }
 0x36a   : > { %v3572_v27 = vrot.slane %v3571_v18, 2  ;;  %v3578_v2 = vrot.slane %v3577_v62, 2  ;;  %v3613_v12 = vadd.f32 %v3612_v59, %v3545_v25  ;;  %v3584_v16 = vrot.slane %v3583_v40, 2 }
 0x36b   : > { %v5486_v58 = vpop.f32.mrb[46].mxu1  ;;  %v3590_v17 = vrot.slane %v3589_v5, 2  ;;  %v3596_v22 = vrot.slane %v3595_v1, 2  ;;  %v3602_v48 = vrot.slane %v3601_v57, 2  ;;  %v3608_v29 = vrot.slane %v3607_v43, 2 }
 0x36c   : > { %5986 = vst [vmem:[#allocation34_spill] sm:$0xff] %v5486_v58  ;;  %v5488_v56 = vpop.f32.mrb[47].mxu1  ;;  %v3573_v26 = vadd.f32 %v3572_v27, %v3571_v18  ;;  %v3579_v19 = vadd.f32 %v3578_v2, %v3577_v62  ;;  %v3614_v13 = vrot.slane %v3613_v12, 2  ;;  %v3585_v20 = vadd.f32 %v3584_v16, %v3583_v40 }
 0x36d   : > { %5987 = vst [vmem:[#allocation35_spill] sm:$0xff] %v5488_v56  ;;  %v3591_v55 = vadd.f32 %v3590_v17, %v3589_v5  ;;  %v3597_v41 = vadd.f32 %v3596_v22, %v3595_v1  ;;  %v3603_v61 = vadd.f32 %v3602_v48, %v3601_v57  ;;  %v3609_v23 = vadd.f32 %v3608_v29, %v3607_v43 }
 0x36e   : > { %v3574_v21 = vrot.slane %v3573_v26, 1  ;;  %v3580_v60 = vrot.slane %v3579_v19, 1  ;;  %v3615_v25 = vadd.f32 %v3614_v13, %v3613_v12  ;;  %v3586_v4 = vrot.slane %v3585_v20, 1 }
 0x36f   : > { %v5490_v51 = vpop.f32.mrb[48].mxu1  ;;  %v3592_v59 = vrot.slane %v3591_v55, 1  ;;  %v3598_v56 = vrot.slane %v3597_v41, 1  ;;  %v3604_v58 = vrot.slane %v3603_v61, 1  ;;  %v3610_v16 = vrot.slane %v3609_v23, 1 }
 0x370   : > { %v5492_v39 = vpop.f32.mrb[49].mxu1  ;;  %v5494_v18 = vadd.f32 %v3574_v21, %v3573_v26  ;;  %v5496_v2 = vadd.f32 %v3580_v60, %v3579_v19  ;;  %v3616_v17 = vrot.slane %v3615_v25, 1  ;;  %v5498_v22 = vadd.f32 %v3586_v4, %v3585_v20 }
 0x371   : > { %v5500_v57 = vadd.f32 %v3592_v59, %v3591_v55  ;;  %v5502_v48 = vadd.f32 %v3598_v56, %v3597_v41  ;;  %v5504_v43 = vadd.f32 %v3604_v58, %v3603_v61  ;;  %v5506_v12 = vadd.f32 %v3610_v16, %v3609_v23 }
 0x372   : > { %v5508_v62 = vadd.f32 %v3616_v17, %v3615_v25  ;;  %v3618_v40 = vrot.slane %v5473_v63, 4  ;;  %v3624_v5 = vrot.slane %v3547_v45, 4  ;;  %v3630_v1 = vrot.slane %v5476_v28, 4 }
 0x373   : > { %v3636_v27 = vrot.slane %v5482_v14, 4  ;;  %v5988_v26 = vcombine.high %v5303_v30, %v5376_v7  ;;  %v2790_v56 = vadd.f32 %v5446_v3, %v5305_v31  ;;  %v5989_v13 = vcombine.high %v5309_v35, %v5384_v15 }
 0x374   : > { %v3619_v58 = vadd.f32 %v3618_v40, %v5473_v63  ;;  %v3625_v29 = vadd.f32 %v3624_v5, %v3547_v45  ;;  %v2792_v55 = vadd.f32 %v5451_v33, %v5305_v31  ;;  %v3631_v41 = vadd.f32 %v3630_v1, %v5476_v28 }
 0x375   : > { %v1805_v19 = vrot.slane %v5988_v26, %v5239_v6  ;;  %v2077_v20 = vrot.slane %v5989_v13, %v5239_v6  ;;  %v3637_v61 = vadd.f32 %v3636_v27, %v5482_v14 }
 0x376   : > { %v3620_v3 = vrot.slane %v3619_v58, 2  ;;  %v3626_v21 = vrot.slane %v3625_v29, 2  ;;  %v3632_v60 = vrot.slane %v3631_v41, 2 }
 0x377   : > { %v1812_v30 = vcombine.low %v5268_v36, %v1805_v19  ;;  %v1813_v7 = vcombine.high %v5268_v36, %v1805_v19  ;;  %v2084_v63 = vcombine.low %v5271_v37, %v2077_v20  ;;  %v2085_v45 = vcombine.high %v5271_v37, %v2077_v20 }
 0x378   : > { %v3638_v35 = vrot.slane %v3637_v61, 2  ;;  %v3621_v33 = vadd.f32 %v3620_v3, %v3619_v58  ;;  %v3627_v25 = vadd.f32 %v3626_v21, %v3625_v29  ;;  %v3633_v4 = vadd.f32 %v3632_v60, %v3631_v41 }
 0x379   : > { %v3480_v15 = vadd.f32 %v2790_v56, %v1812_v30  ;;  %v3482_v23 = vadd.f32 %v5356_v24, %v1813_v7  ;;  %v3481_v28 = vadd.f32 %v2792_v55, %v2084_v63  ;;  %v3483_v14 = vadd.f32 %v5360_v38, %v2085_v45 }
 0x37a   : > { %v3639_v59 = vadd.f32 %v3638_v35, %v3637_v61  ;;  %v3622_v17 = vrot.slane %v3621_v33, 1  ;;  %v3628_v40 = vrot.slane %v3627_v25, 1  ;;  %v3634_v27 = vrot.slane %v3633_v4, 1 }
 0x37b   : > { %v3512_v16 = vmax.f32 %v3480_v15, 0.0  ;;  %v3514_v36 = vmax.f32 %v3482_v23, 0.0  ;;  %v3513_v5 = vmax.f32 %v3481_v28, 0.0  ;;  %v3515_v1 = vmax.f32 %v3483_v14, 0.0 }
 0x37c   : > { %v3640_v37 = vrot.slane %v3639_v59, 1  ;;  %v5536_v24 = vadd.f32 %v3622_v17, %v3621_v33  ;;  %v5538_v56 = vadd.f32 %v3628_v40, %v3627_v25  ;;  %v5542_v29 = vadd.f32 %v3634_v27, %v3633_v4 }
 0x37d   : > { %v3550_v26 = vmul.f32 %v5316_v0, %v3512_v16  ;;  %v3552_v19 = vmul.f32 %v5316_v0, %v3514_v36  ;;  %v3551_v38 = vmul.f32 %v5316_v0, %v3513_v5  ;;  %v3553_v58 = vmul.f32 %v5316_v0, %v3515_v1 }
 0x37e   : > { %v5544_v13 = vadd.f32 %v3640_v37, %v3639_v59  ;;  %v5990_v30 = vcombine.low %v5331_v8, %v5407_v9  ;;  %v2932_v3 = vadd.f32 %v5459_v53, %v5305_v31  ;;  %v5991_v45 = vcombine.low %v5345_v42, %v5415_v52 }
 0x37f   : > { %v3642_v20 = vrot.slane %v3550_v26, 4  ;;  %v3654_v55 = vrot.slane %v3552_v19, 4  ;;  %v3648_v41 = vrot.slane %v3551_v38, 4  ;;  %v3660_v61 = vrot.slane %v3553_v58, 4 }
 0x380   : > { %v1918_v7 = vrot.slane %v5990_v30, %v5239_v6  ;;  %v2190_v60 = vrot.slane %v5991_v45, %v5239_v6  ;;  %v2934_v35 = vadd.f32 %v5464_v32, %v5305_v31 }
 0x381   : > { %v3643_v21 = vadd.f32 %v3642_v20, %v3550_v26  ;;  %v3655_v63 = vadd.f32 %v3654_v55, %v3552_v19  ;;  %v3649_v15 = vadd.f32 %v3648_v41, %v3551_v38  ;;  %v3661_v23 = vadd.f32 %v3660_v61, %v3553_v58 }
 0x382   : > { %v1942_v33 = vcombine.low %v5274_v10, %v1918_v7  ;;  %v1943_v25 = vcombine.high %v5274_v10, %v1918_v7  ;;  %v2214_v53 = vcombine.low %v5286_v49, %v2190_v60  ;;  %v2215_v4 = vcombine.high %v5286_v49, %v2190_v60 }
 0x383   : > { %v3644_v28 = vrot.slane %v3643_v21, 2  ;;  %v3656_v14 = vrot.slane %v3655_v63, 2  ;;  %v3650_v59 = vrot.slane %v3649_v15, 2  ;;  %v3662_v16 = vrot.slane %v3661_v23, 2 }
 0x384   : > { %v3484_v36 = vadd.f32 %v2932_v3, %v1942_v33  ;;  %v3486_v17 = vadd.f32 %v5364_v34, %v1943_v25  ;;  %v3485_v32 = vadd.f32 %v2934_v35, %v2214_v53  ;;  %v3487_v1 = vadd.f32 %v5368_v46, %v2215_v4 }
 0x385   : > { %v3645_v40 = vadd.f32 %v3644_v28, %v3643_v21  ;;  %v3657_v5 = vadd.f32 %v3656_v14, %v3655_v63  ;;  %v3651_v27 = vadd.f32 %v3650_v59, %v3649_v15  ;;  %v3663_v37 = vadd.f32 %v3662_v16, %v3661_v23 }
 0x386   : > { %v3516_v26 = vmax.f32 %v3484_v36, 0.0  ;;  %v3518_v10 = vmax.f32 %v3486_v17, 0.0  ;;  %v3517_v58 = vmax.f32 %v3485_v32, 0.0  ;;  %v3519_v20 = vmax.f32 %v3487_v1, 0.0 }
 0x387   : > { %v3646_v19 = vrot.slane %v3645_v40, 1  ;;  %v3658_v38 = vrot.slane %v3657_v5, 1  ;;  %v3652_v55 = vrot.slane %v3651_v27, 1  ;;  %v3664_v49 = vrot.slane %v3663_v37, 1 }
 0x388   : > { %v3554_v41 = vmul.f32 %v5316_v0, %v3516_v26  ;;  %v3556_v61 = vmul.f32 %v5316_v0, %v3518_v10  ;;  %v3555_v46 = vmul.f32 %v5316_v0, %v3517_v58  ;;  %v3557_v7 = vmul.f32 %v5316_v0, %v3519_v20 }
 0x389   : > { %v5566_v34 = vadd.f32 %v3646_v19, %v3645_v40  ;;  %v5568_v30 = vadd.f32 %v3658_v38, %v3657_v5  ;;  %v5572_v3 = vadd.f32 %v3652_v55, %v3651_v27  ;;  %v5574_v21 = vadd.f32 %v3664_v49, %v3663_v37  ;;  %v5994_v37 = vld [vmem:[#allocation30_spill] sm:$0xff] }
 0x38a   : > { %v3666_v63 = vrot.slane %v3554_v41, 4  ;;  %v3678_v45 = vrot.slane %v3556_v61, 4  ;;  %v3672_v60 = vrot.slane %v3555_v46, 4  ;;  %v3684_v35 = vrot.slane %v3557_v7, 4 }
 0x38b   : > { %v5992_v15 = vcombine.high %v5331_v8, %v5407_v9  ;;  %v3074_v33 = vadd.f32 %v5478_v50, %v5305_v31  ;;  %v5993_v14 = vcombine.high %v5345_v42, %v5415_v52  ;;  %v3076_v4 = vadd.f32 %v5484_v44, %v5305_v31 }
 0x38c   : > { %v3667_v25 = vadd.f32 %v3666_v63, %v3554_v41  ;;  %v3679_v28 = vadd.f32 %v3678_v45, %v3556_v61  ;;  %v3673_v59 = vadd.f32 %v3672_v60, %v3555_v46  ;;  %v3685_v16 = vadd.f32 %v3684_v35, %v3557_v7 }
 0x38d   : > { %v1925_v23 = vrot.slane %v5992_v15, %v5239_v6  ;;  %v2197_v53 = vrot.slane %v5993_v14, %v5239_v6 }
 0x38e   : > { %v3668_v9 = vrot.slane %v3667_v25, 2  ;;  %v3680_v17 = vrot.slane %v3679_v28, 2  ;;  %v3674_v5 = vrot.slane %v3673_v59, 2  ;;  %v3686_v32 = vrot.slane %v3685_v16, 2 }
 0x38f   : > { %v1944_v36 = vcombine.low %v5277_v11, %v1925_v23  ;;  %v1945_v8 = vcombine.high %v5277_v11, %v1925_v23  ;;  %v2216_v50 = vcombine.low %v5289_v54, %v2197_v53  ;;  %v2217_v40 = vcombine.high %v5289_v54, %v2197_v53 }
 0x390   : > { %v3669_v52 = vadd.f32 %v3668_v9, %v3667_v25  ;;  %v3681_v27 = vadd.f32 %v3680_v17, %v3679_v28  ;;  %v3675_v10 = vadd.f32 %v3674_v5, %v3673_v59  ;;  %v3687_v19 = vadd.f32 %v3686_v32, %v3685_v16  ;;  %v5995_v28 = vld [vmem:[#allocation31_spill] sm:$0xff] }
 0x391   : > { %v3488_v1 = vadd.f32 %v3074_v33, %v1944_v36  ;;  %v3490_v42 = vadd.f32 %v5372_v47, %v1945_v8  ;;  %v3489_v44 = vadd.f32 %v3076_v4, %v2216_v50  ;;  %v3491_v26 = vadd.f32 %v5994_v37, %v2217_v40 }
 0x392   : > { %v3670_v58 = vrot.slane %v3669_v52, 1  ;;  %v3682_v20 = vrot.slane %v3681_v27, 1  ;;  %v3676_v41 = vrot.slane %v3675_v10, 1  ;;  %v3688_v54 = vrot.slane %v3687_v19, 1 }
 0x393   : > { %v3520_v38 = vmax.f32 %v3488_v1, 0.0  ;;  %v3522_v11 = vmax.f32 %v3490_v42, 0.0  ;;  %v3521_v55 = vmax.f32 %v3489_v44, 0.0  ;;  %v3523_v49 = vmax.f32 %v3491_v26, 0.0 }
 0x394   : > { %v3671_v47 = vadd.f32 %v3670_v58, %v3669_v52  ;;  %v3683_v7 = vadd.f32 %v3682_v20, %v3681_v27  ;;  %v3677_v60 = vadd.f32 %v3676_v41, %v3675_v10  ;;  %v3689_v35 = vadd.f32 %v3688_v54, %v3687_v19  ;;  %v5997_v20 = vld [vmem:[#allocation32_spill] sm:$0xff]  ;;  %v5999_v41 = vld [vmem:[#allocation34_spill] sm:$0xff] }
 0x395   : > { %v3558_v61 = vmul.f32 %v5316_v0, %v3520_v38  ;;  %v3560_v46 = vmul.f32 %v5316_v0, %v3522_v11  ;;  %v3559_v63 = vmul.f32 %v5316_v0, %v3521_v55  ;;  %v3561_v45 = vmul.f32 %v5316_v0, %v3523_v49 }
 0x396   : > { %v3772_v14 = vadd.f32 %v5995_v28, %v5494_v18  ;;  %v3773_v53 = vadd.f32 %v5995_v28, %v5496_v2  ;;  %v3774_v16 = vadd.f32 %v5995_v28, %v5498_v22  ;;  %v3775_v36 = vadd.f32 %v5995_v28, %v5500_v57 }
 0x397   : > { %v3690_v15 = vrot.slane %v3558_v61, 4  ;;  %v3702_v23 = vrot.slane %v3560_v46, 4  ;;  %v3696_v33 = vrot.slane %v3559_v63, 4  ;;  %v3708_v25 = vrot.slane %v3561_v45, 4 }
 0x398   : > { %v3776_v17 = vadd.f32 %v5995_v28, %v5502_v48  ;;  %v3777_v50 = vadd.f32 %v5995_v28, %v5504_v43  ;;  %v3778_v2 = vadd.f32 %v5995_v28, %v5506_v12  ;;  %v3779_v5 = vadd.f32 %v5995_v28, %v5508_v62 }
 0x399   : > { %v3691_v4 = vadd.f32 %v3690_v15, %v3558_v61  ;;  %v3703_v59 = vadd.f32 %v3702_v23, %v3560_v46  ;;  %v3697_v8 = vadd.f32 %v3696_v33, %v3559_v63  ;;  %v3709_v9 = vadd.f32 %v3708_v25, %v3561_v45  ;;  %v6000_v61 = vld [vmem:[#allocation20_spill] sm:$0xff]  ;;  %v6002_v23 = vld [vmem:[#allocation29_spill] sm:$0xff] }
 0x39a   : > { %v3780_v57 = vadd.f32 %v5995_v28, %v5536_v24  ;;  %v3781_v1 = vadd.f32 %v5995_v28, %v5538_v56  ;;  %v3782_v43 = vadd.f32 %v5995_v28, %v5542_v29  ;;  %v3783_v52 = vadd.f32 %v5995_v28, %v5544_v13  ;;  %v6003_v33 = vld [vmem:[#allocation33_spill] sm:$0xff] }
 0x39b   : > { %v3692_v18 = vrot.slane %v3691_v4, 2  ;;  %v3704_v40 = vrot.slane %v3703_v59, 2  ;;  %v3698_v22 = vrot.slane %v3697_v8, 2  ;;  %v3710_v32 = vrot.slane %v3709_v9, 2 }
 0x39c   : > { %v3784_v62 = vadd.f32 %v5995_v28, %v5566_v34  ;;  %v3785_v44 = vadd.f32 %v5995_v28, %v5572_v3  ;;  %v3786_v56 = vadd.f32 %v5995_v28, %v5568_v30  ;;  %v3787_v26 = vadd.f32 %v5995_v28, %v5574_v21  ;;  %v5996_v21 = vld [vmem:[#allocation28_spill] sm:$0xff] }
 0x39d   : > { %v3693_v48 = vadd.f32 %v3692_v18, %v3691_v4  ;;  %v3705_v42 = vadd.f32 %v3704_v40, %v3703_v59  ;;  %v3699_v12 = vadd.f32 %v3698_v22, %v3697_v8  ;;  %v3711_v27 = vadd.f32 %v3710_v32, %v3709_v9  ;;  %v6005_v59 = vld [vmem:[#allocation21_spill] sm:$0xff]  ;;  %v6006_v40 = vld [vmem:[#allocation22_spill] sm:$0xff] }
 0x39e   : > { %v5631_v13 = vadd.f32 %v5995_v28, %v3671_v47  ;;  %v5634_v19 = vadd.f32 %v5995_v28, %v3677_v60  ;;  %v5637_v3 = vadd.f32 %v5995_v28, %v3683_v7  ;;  %v5640_v11 = vadd.f32 %v5995_v28, %v3689_v35  ;;  %v6001_v60 = vld [vmem:[#allocation24_spill] sm:$0xff] }
 0x39f   : > { %v3694_v24 = vrot.slane %v3693_v48, 1  ;;  %v3706_v37 = vrot.slane %v3705_v42, 1  ;;  %v3700_v29 = vrot.slane %v3699_v12, 1  ;;  %v3712_v10 = vrot.slane %v3711_v27, 1 }
 0x3a0   : > { %v5998_v55 = vcombine.low %v5996_v21, %v5997_v20  ;;  %v3216_v54 = vadd.f32 %v5999_v41, %v5305_v31  ;;  %v3287_v46 = vadd.f32 %v6000_v61, %v5305_v31  ;;  %v6004_v25 = vcombine.low %v6002_v23, %v6003_v33  ;;  %v6008_v61 = vld [vmem:[#allocation35_spill] sm:$0xff] }
 0x3a1   : > { %v3695_v34 = vadd.f32 %v3694_v24, %v3693_v48  ;;  %v3707_v38 = vadd.f32 %v3706_v37, %v3705_v42  ;;  %v3701_v30 = vadd.f32 %v3700_v29, %v3699_v12  ;;  %v3713_v58 = vadd.f32 %v3712_v10, %v3711_v27  ;;  %v6007_v42 = vld [vmem:[#allocation26_spill] sm:$0xff] }
 0x3a2   : > { %v1934_v49 = vrot.slane %v5998_v55, %v5239_v6  ;;  %v2206_v4 = vrot.slane %v6004_v25, %v5239_v6  ;;  %v3289_v8 = vadd.f32 %v6005_v59, %v5305_v31  ;;  %v3429_v22 = vadd.f32 %v6006_v40, %v5305_v31 }
 0x3a3   : > { %v5651_v47 = vadd.f32 %v5995_v28, %v3695_v34  ;;  %v5654_v7 = vadd.f32 %v5995_v28, %v3707_v38  ;;  %v5657_v63 = vadd.f32 %v5995_v28, %v3701_v30  ;;  %v5660_v45 = vadd.f32 %v5995_v28, %v3713_v58 }
 0x3a4   : > { %v1946_v35 = vcombine.low %v6001_v60, %v1934_v49  ;;  %v1947_v15 = vcombine.high %v6001_v60, %v1934_v49  ;;  %v4247_v32 = vmul.f32 -1.442695, %v3772_v14  ;;  %v4248_v48 = vmul.f32 -1.442695, %v3773_v53 }
 0x3a5   : > { %v2218_v12 = vcombine.low %v6007_v42, %v2206_v4  ;;  %v4249_v37 = vmul.f32 -1.442695, %v3774_v16  ;;  %v4250_v29 = vmul.f32 -1.442695, %v3775_v36  ;;  %v4251_v10 = vmul.f32 -1.442695, %v3776_v17 }
 0x3a6   : > { %v3492_v9 = vadd.f32 %v3216_v54, %v1946_v35  ;;  %v3494_v18 = vadd.f32 %v3287_v46, %v1947_v15  ;;  %v4252_v34 = vmul.f32 -1.442695, %v3777_v50  ;;  %v4253_v38 = vmul.f32 -1.442695, %v3778_v2 }
 0x3a7   : > { %v2219_v30 = vcombine.high %v6007_v42, %v2206_v4  ;;  %v4254_v49 = vmul.f32 -1.442695, %v3779_v5  ;;  %v4255_v41 = vmul.f32 -1.442695, %v3780_v57  ;;  %v4256_v54 = vmul.f32 -1.442695, %v3781_v1 }
 0x3a8   : > { %v3524_v27 = vmax.f32 %v3492_v9, 0.0  ;;  %v3526_v24 = vmax.f32 %v3494_v18, 0.0  ;;  %v4257_v14 = vmul.f32 -1.442695, %v3782_v43  ;;  %v4258_v53 = vmul.f32 -1.442695, %v3783_v52 }
 0x3a9   : > { %v3218_v46 = vadd.f32 %v6008_v61, %v5305_v31  ;;  %v4259_v36 = vmul.f32 -1.442695, %v3784_v62  ;;  %v4260_v17 = vmul.f32 -1.442695, %v3785_v44  ;;  %v5678_v50 = vmul.f32 -1.442695, %v3786_v56 }
 0x3aa   : > { %v3562_v58 = vmul.f32 %v5316_v0, %v3524_v27  ;;  %v3564_v55 = vmul.f32 %v5316_v0, %v3526_v24  ;;  %v5680_v2 = vmul.f32 -1.442695, %v3787_v26  ;;  %v3495_v15 = vadd.f32 %v3289_v8, %v2219_v30  ;;  %v6010_v56 = vld [vmem:[#allocation25_spill] sm:$0xff] }
 0x3ab   : > { %v3493_v35 = vadd.f32 %v3218_v46, %v2218_v12  ;;  %4406 = vpow2.f32 %v4247_v32  ;;  %v6009_v5 = vcombine.high %v5996_v21, %v5997_v20  ;;  %v3358_v52 = vadd.f32 %v5490_v51, %v5305_v31 }
 0x3ac   : > { %v3714_v60 = vrot.slane %v3562_v58, 4  ;;  %v3726_v16 = vrot.slane %v3564_v55, 4  ;;  %v3527_v43 = vmax.f32 %v3495_v15, 0.0  ;;  %4408 = vpow2.f32 %v4248_v48 }
 0x3ad   : > { %v1941_v57 = vrot.slane %v6009_v5, %v5239_v6  ;;  %v3525_v1 = vmax.f32 %v3493_v35, 0.0  ;;  %4410 = vpow2.f32 %v4249_v37 }
 0x3ae   : > { %v3715_v25 = vadd.f32 %v3714_v60, %v3562_v58  ;;  %v3727_v4 = vadd.f32 %v3726_v16, %v3564_v55  ;;  %v3565_v8 = vmul.f32 %v5316_v0, %v3527_v43  ;;  %4412 = vpow2.f32 %v4250_v29 }
 0x3af   : > { %v1948_v26 = vcombine.low %v6010_v56, %v1941_v57  ;;  %v3563_v59 = vmul.f32 %v5316_v0, %v3525_v1  ;;  %v1949_v9 = vcombine.high %v6010_v56, %v1941_v57  ;;  %4414 = vpow2.f32 %v4251_v10 }
 0x3b0   : > { %v3716_v62 = vrot.slane %v3715_v25, 2  ;;  %v3728_v44 = vrot.slane %v3727_v4, 2  ;;  %v3732_v32 = vrot.slane %v3565_v8, 4  ;;  %4416 = vpow2.f32 %v4252_v34 }
 0x3b1   : > { %v3496_v18 = vadd.f32 %v3358_v52, %v1948_v26  ;;  %v3720_v40 = vrot.slane %v3563_v59, 4  ;;  %v3498_v51 = vadd.f32 %v3429_v22, %v1949_v9  ;;  %4418 = vpow2.f32 %v4253_v38 }
 0x3b2   : > { %v3717_v21 = vadd.f32 %v3716_v62, %v3715_v25  ;;  %v3729_v20 = vadd.f32 %v3728_v44, %v3727_v4  ;;  %v3733_v24 = vadd.f32 %v3732_v32, %v3565_v8  ;;  %4420 = vpow2.f32 %v4254_v49 }
 0x3b3   : > { %v3528_v12 = vmax.f32 %v3496_v18, 0.0  ;;  %v3721_v27 = vadd.f32 %v3720_v40, %v3563_v59  ;;  %v3530_v37 = vmax.f32 %v3498_v51, 0.0  ;;  %4422 = vpow2.f32 %v4255_v41 }
 0x3b4   : > { %v3718_v48 = vrot.slane %v3717_v21, 1  ;;  %v3730_v42 = vrot.slane %v3729_v20, 1  ;;  %v3734_v10 = vrot.slane %v3733_v24, 2  ;;  %4424 = vpow2.f32 %v4256_v54 }
 0x3b5   : > { %v3566_v58 = vmul.f32 %v5316_v0, %v3528_v12  ;;  %v3722_v55 = vrot.slane %v3721_v27, 2  ;;  %v3568_v61 = vmul.f32 %v5316_v0, %v3530_v37  ;;  %v5694_v34 = vpop.eup %4406  ;;  %4426 = vpow2.f32 %v4257_v14 }
 0x3b6   : > { %v3719_v30 = vadd.f32 %v3718_v48, %v3717_v21  ;;  %v3731_v29 = vadd.f32 %v3730_v42, %v3729_v20  ;;  %v5698_v49 = vpop.eup %4408  ;;  %v3735_v16 = vadd.f32 %v3734_v10, %v3733_v24  ;;  %4428 = vpow2.f32 %v4258_v53 }
 0x3b7   : > { %v3738_v46 = vrot.slane %v3566_v58, 4  ;;  %v3723_v60 = vadd.f32 %v3722_v55, %v3721_v27  ;;  %v3750_v41 = vrot.slane %v3568_v61, 4  ;;  %v5700_v35 = vpop.eup %4410  ;;  %4430 = vpow2.f32 %v4259_v36  ;;  %v6012_v55 = vld [vmem:[#allocation23_spill] sm:$0xff] }
 0x3b8   : > { %v3796_v22 = vadd.f32 %v5995_v28, %v3719_v30  ;;  %v3798_v38 = vadd.f32 %v5995_v28, %v3731_v29  ;;  %v5702_v4 = vpop.eup %4412  ;;  %v3736_v57 = vrot.slane %v3735_v16, 1  ;;  %4432 = vpow2.f32 %v4260_v17 }
 0x3b9   : > { %v3739_v25 = vadd.f32 %v3738_v46, %v3566_v58  ;;  %v3724_v5 = vrot.slane %v3723_v60, 1  ;;  %v3751_v1 = vadd.f32 %v3750_v41, %v3568_v61  ;;  %v5704_v14 = vpop.eup %4414  ;;  %v4263_v43 = vmul.f32 -1.442695, %v5631_v13  ;;  %v6013_v46 = vld [vmem:[#allocation27_spill] sm:$0xff] }
 0x3ba   : > { %v4271_v15 = vmul.f32 -1.442695, %v3796_v22  ;;  %v4273_v54 = vmul.f32 -1.442695, %v3798_v38  ;;  %v4264_v53 = vmul.f32 -1.442695, %v5634_v19  ;;  %v5708_v62 = vpop.eup %4416  ;;  %v3737_v36 = vadd.f32 %v3736_v57, %v3735_v16 }
 0x3bb   : > { %v3740_v52 = vrot.slane %v3739_v25, 2  ;;  %v3725_v44 = vadd.f32 %v3724_v5, %v3723_v60  ;;  %v3752_v56 = vrot.slane %v3751_v1, 2  ;;  %v5710_v26 = vpop.eup %4418  ;;  %v4265_v59 = vmul.f32 -1.442695, %v5637_v3 }
 0x3bc   : > { %4434 = vpow2.f32 %v4271_v15  ;;  %v5714_v8 = vpop.eup %4420  ;;  %v3799_v19 = vadd.f32 %v5995_v28, %v3737_v36  ;;  %v4266_v20 = vmul.f32 -1.442695, %v5640_v11  ;;  %v4267_v48 = vmul.f32 -1.442695, %v5651_v47 }
 0x3bd   : > { %4436 = vpow2.f32 %v4273_v54  ;;  %v3741_v17 = vadd.f32 %v3740_v52, %v3739_v25  ;;  %v3797_v13 = vadd.f32 %v5995_v28, %v3725_v44  ;;  %v3753_v9 = vadd.f32 %v3752_v56, %v3751_v1  ;;  %v5719_v21 = vpop.eup %4422 }
 0x3be   : > { %4438 = vpow2.f32 %v5678_v50  ;;  %v5722_v40 = vpop.eup %4424  ;;  %v4274_v50 = vmul.f32 -1.442695, %v3799_v19  ;;  %v4268_v12 = vmul.f32 -1.442695, %v5657_v63  ;;  %v4269_v24 = vmul.f32 -1.442695, %v5654_v7 }
 0x3bf   : > { %4440 = vpow2.f32 %v5680_v2  ;;  %v3742_v18 = vrot.slane %v3741_v17, 1  ;;  %v4272_v3 = vmul.f32 -1.442695, %v3797_v13  ;;  %v3754_v32 = vrot.slane %v3753_v9, 1  ;;  %v5724_v51 = vpop.eup %4426 }
 0x3c0   : > { %4442 = vpow2.f32 %v4263_v43  ;;  %v5727_v2 = vpop.eup %4428  ;;  %v6011_v29 = vcombine.high %v6002_v23, %v6003_v33  ;;  %v3431_v10 = vadd.f32 %v6012_v55, %v5305_v31  ;;  %v3360_v7 = vadd.f32 %v5492_v39, %v5305_v31 }
 0x3c1   : > { %4444 = vpow2.f32 %v4264_v53  ;;  %v3743_v42 = vadd.f32 %v3742_v18, %v3741_v17  ;;  %v3755_v11 = vadd.f32 %v3754_v32, %v3753_v9  ;;  %v5730_v27 = vpop.eup %4430  ;;  %v4270_v38 = vmul.f32 -1.442695, %v5660_v45 }
 0x3c2   : > { %4446 = vpow2.f32 %v4265_v59  ;;  %v5734_v30 = vpop.eup %4432  ;;  %v2213_v58 = vrot.slane %v6011_v29, %v5239_v6  ;;  %v3900_v39 = vadd.f32 1.0, %v5694_v34  ;;  %v3901_v5 = vadd.f32 1.0, %v5698_v49 }
 0x3c3   : > { %4448 = vpow2.f32 %v4272_v3  ;;  %v3800_v37 = vadd.f32 %v5995_v28, %v3743_v42  ;;  %v3802_v47 = vadd.f32 %v5995_v28, %v3755_v11  ;;  %v3902_v56 = vadd.f32 1.0, %v5700_v35 }
 0x3c4   : > { %4450 = vpow2.f32 %v4274_v50  ;;  %v2220_v60 = vcombine.low %v6013_v46, %v2213_v58  ;;  %v2221_v23 = vcombine.high %v6013_v46, %v2213_v58  ;;  %v3903_v49 = vadd.f32 1.0, %v5702_v4 }
 0x3c5   : > { %4452 = vpow2.f32 %v4266_v20  ;;  %v4275_v6 = vmul.f32 -1.442695, %v3800_v37  ;;  %v4277_v15 = vmul.f32 -1.442695, %v3802_v47  ;;  %v3904_v9 = vadd.f32 1.0, %v5704_v14  ;;  %v4535_v47 = vld [vmem:[%s5001_s21 + $0xd0] sm:$0xff] }
 0x3c6   : > { %v4435_v63 = vpop.eup %4434  ;;  %4454 = vpow2.f32 %v4267_v48  ;;  %v3497_v54 = vadd.f32 %v3360_v7, %v2220_v60  ;;  %v3499_v45 = vadd.f32 %v3431_v10, %v2221_v23  ;;  %v3906_v4 = vadd.f32 1.0, %v5710_v26 }
 0x3c7   : > { %v4437_v61 = vpop.eup %4436  ;;  %v3924_v22 = vadd.f32 1.0, %v4435_v63  ;;  %4456 = vpow2.f32 %v4268_v12  ;;  %v3907_v48 = vadd.f32 1.0, %v5714_v8  ;;  %v4534_v12 = vld [vmem:[%s5001_s21 + $0xc0] sm:$0xff]  ;;  %v3909_v55 = vadd.f32 1.0, %v5722_v40 }
 0x3c8   : > { %v5747_v16 = vpop.eup %4438  ;;  %v3926_v41 = vadd.f32 1.0, %v4437_v61  ;;  %4458 = vpow2.f32 %v4269_v24  ;;  %v3529_v57 = vmax.f32 %v3497_v54, 0.0  ;;  %v3531_v43 = vmax.f32 %v3499_v45, 0.0 }
 0x3c9   : > { %v5750_v33 = vpop.eup %4440  ;;  %4460 = vrcp.f32 %v3924_v22  ;;  %v3908_v24 = vadd.f32 1.0, %v5719_v21  ;;  %v3910_v22 = vadd.f32 1.0, %v5724_v51  ;;  %v3911_v60 = vadd.f32 1.0, %v5727_v2  ;;  %v4537_v51 = vld [vmem:[%s5001_s21 + $0x8] sm:$0xff] }
 0x3ca   : > { %v5752_v31 = vpop.eup %4442  ;;  %4462 = vrcp.f32 %v3926_v41  ;;  %v3567_v52 = vmul.f32 %v5316_v0, %v3529_v57  ;;  %v3569_v34 = vmul.f32 %v5316_v0, %v3531_v43  ;;  %v3905_v0 = vadd.f32 1.0, %v5708_v62 }
 0x3cb   : > { %v5755_v25 = vpop.eup %4444  ;;  %4464 = vpow2.f32 %v4270_v38 }
 0x3cc   : > { %v5758_v1 = vpop.eup %4446  ;;  %4466 = vpow2.f32 %v4275_v6  ;;  %v3744_v13 = vrot.slane %v3567_v52, 4  ;;  %v3756_v20 = vrot.slane %v3569_v34, 4  ;;  %v4536_v6 = vld [vmem:[%s5001_s21] sm:$0xff] }
 0x3cd   : > { %v4449_v53 = vpop.eup %4448  ;;  %4468 = vpow2.f32 %v4277_v15  ;;  %v3912_v15 = vadd.f32 1.0, %v5730_v27 }
 0x3ce   : > { %v4451_v44 = vpop.eup %4450  ;;  %v3925_v36 = vadd.f32 1.0, %v4449_v53  ;;  %4470 = vrcp.f32 %v3900_v39  ;;  %v3745_v35 = vadd.f32 %v3744_v13, %v3567_v52  ;;  %v3757_v50 = vadd.f32 %v3756_v20, %v3569_v34  ;;  %v4539_v53 = vld [vmem:[%s5001_s21 + $0xd8] sm:$0xff]  ;;  %v4540_v34 = vld [vmem:[%s5001_s21 + $0x10] sm:$0xff] }
 0x3cf   : > { %v5763_v59 = vpop.eup %4452  ;;  %v3927_v17 = vadd.f32 1.0, %v4451_v44  ;;  %4472 = vrcp.f32 %v3901_v5  ;;  %v4538_v5 = vld [vmem:[%s5001_s21 + $0xc8] sm:$0xff]  ;;  %v3914_v13 = vadd.f32 1.0, %v5747_v16 }
 0x3d0   : > { %v5766_v19 = vpop.eup %4454  ;;  %4474 = vrcp.f32 %v3925_v36  ;;  %v3746_v42 = vrot.slane %v3745_v35, 2  ;;  %v3758_v62 = vrot.slane %v3757_v50, 2  ;;  %v3913_v36 = vadd.f32 1.0, %v5734_v30  ;;  %v4542_v30 = vld [vmem:[%s5001_s21 + $0x20] sm:$0xff]  ;;  %v4543_v16 = vld [vmem:[%s5001_s21 + $0x28] sm:$0xff] }
 0x3d1   : > { %v5769_v18 = vpop.eup %4456  ;;  %4476 = vrcp.f32 %v3927_v17 }
 0x3d2   : > { %v5772_v3 = vpop.eup %4458  ;;  %4478 = vrcp.f32 %v3902_v56  ;;  %v3747_v26 = vadd.f32 %v3746_v42, %v3745_v35  ;;  %v3759_v8 = vadd.f32 %v3758_v62, %v3757_v50  ;;  %v3915_v35 = vadd.f32 1.0, %v5750_v33  ;;  %v4544_v33 = vld [vmem:[%s5001_s21 + $0x30] sm:$0xff] }
 0x3d3   : > { %v4461_v32 = vpop.eup %4460  ;;  %4480 = vrcp.f32 %v3903_v49 }
 0x3d4   : > { %v4463_v14 = vpop.eup %4462  ;;  %v4020_v11 = vmul.f32 %v4534_v12, %v4461_v32  ;;  %4482 = vrcp.f32 %v3904_v9  ;;  %v3748_v10 = vrot.slane %v3747_v26, 1  ;;  %v3760_v38 = vrot.slane %v3759_v8, 1 }
 0x3d5   : > { %v5778_v37 = vpop.eup %4464  ;;  %v4022_v29 = vmul.f32 %v4535_v47, %v4463_v14  ;;  %4484 = vrcp.f32 %v3905_v0  ;;  %v3916_v32 = vadd.f32 1.0, %v5752_v31  ;;  %v3917_v14 = vadd.f32 1.0, %v5755_v25  ;;  %v4545_v31 = vld [vmem:[%s5001_s21 + $0x38] sm:$0xff]  ;;  %v4546_v25 = vld [vmem:[%s5001_s21 + $0x40] sm:$0xff] }
 0x3d6   : > { %v4467_v58 = vpop.eup %4466  ;;  %4052 = vst [vmem:[%s5783_s28 + $0xc0] sm:$0xff] %v4020_v11  ;;  %4486 = vrcp.f32 %v3906_v4  ;;  %v3749_v41 = vadd.f32 %v3748_v10, %v3747_v26  ;;  %v3761_v54 = vadd.f32 %v3760_v38, %v3759_v8  ;;  %v4547_v8 = vld [vmem:[%s5001_s21 + $0xe0] sm:$0xff] }
 0x3d7   : > { %v4469_v63 = vpop.eup %4468  ;;  %4054 = vst [vmem:[%s5783_s28 + $0xd0] sm:$0xff] %v4022_v29  ;;  %v3928_v21 = vadd.f32 1.0, %v4467_v58  ;;  %4488 = vrcp.f32 %v3907_v48  ;;  %v3919_v29 = vadd.f32 1.0, %v5763_v59  ;;  %v3921_v59 = vadd.f32 1.0, %v5769_v18  ;;  %v4550_v18 = vld [vmem:[%s5001_s21 + $0x50] sm:$0xff] }
 0x3d8   : > { %v4471_v7 = vpop.eup %4470  ;;  %v3930_v61 = vadd.f32 1.0, %v4469_v63  ;;  %4490 = vrcp.f32 %v3908_v24  ;;  %v3801_v43 = vadd.f32 %v5995_v28, %v3749_v41  ;;  %v3803_v44 = vadd.f32 %v5995_v28, %v3761_v54  ;;  %v4541_v28 = vld [vmem:[%s5001_s21 + $0x18] sm:$0xff] }
 0x3d9   : > { %v4473_v46 = vpop.eup %4472  ;;  %4492 = vrcp.f32 %v3928_v21  ;;  %v3996_v23 = vmul.f32 %v4536_v6, %v4471_v7  ;;  %v3918_v24 = vadd.f32 1.0, %v5758_v1  ;;  %v3920_v1 = vadd.f32 1.0, %v5766_v19  ;;  %v4549_v19 = vld [vmem:[%s5001_s21 + $0x48] sm:$0xff]  ;;  %v4551_v6 = vld [vmem:[%s5001_s21 + $0x58] sm:$0xff] }
 0x3da   : > { %v4475_v40 = vpop.eup %4474  ;;  %4494 = vrcp.f32 %v3930_v61  ;;  %v3997_v39 = vmul.f32 %v4537_v51, %v4473_v46  ;;  %v4276_v56 = vmul.f32 -1.442695, %v3801_v43  ;;  %v4278_v9 = vmul.f32 -1.442695, %v3803_v44  ;;  %v4555_v44 = vld [vmem:[%s5001_s21 + $0x78] sm:$0xff] }
 0x3db   : > { %v4477_v45 = vpop.eup %4476  ;;  %v4021_v57 = vmul.f32 %v4538_v5, %v4475_v40  ;;  %4496 = vrcp.f32 %v3909_v55  ;;  %4028 = vst [vmem:[%s5783_s28] sm:$0xff] %v3996_v23  ;;  %v4548_v55 = vld [vmem:[%s5001_s21 + $0xf0] sm:$0xff]  ;;  %v3922_v61 = vadd.f32 1.0, %v5772_v3  ;;  %v3923_v46 = vadd.f32 1.0, %v5778_v37  ;;  %v4552_v40 = vld [vmem:[%s5001_s21 + $0x60] sm:$0xff]  ;;  %v4553_v5 = vld [vmem:[%s5001_s21 + $0x68] sm:$0xff] }
 0x3dc   : > { %v4479_v2 = vpop.eup %4478  ;;  %v4023_v52 = vmul.f32 %v4539_v53, %v4477_v45  ;;  %4498 = vrcp.f32 %v3910_v22  ;;  %4029 = vst [vmem:[%s5783_s28 + $0x8] sm:$0xff] %v3997_v39 }
 0x3dd   : > { %v4481_v27 = vpop.eup %4480  ;;  %4053 = vst [vmem:[%s5783_s28 + $0xc8] sm:$0xff] %v4021_v57  ;;  %4500 = vrcp.f32 %v3911_v60  ;;  %v3998_v17 = vmul.f32 %v4540_v34, %v4479_v2  ;;  %v4554_v2 = vld [vmem:[%s5001_s21 + $0x70] sm:$0xff] }
 0x3de   : > { %v4483_v49 = vpop.eup %4482  ;;  %4055 = vst [vmem:[%s5783_s28 + $0xd8] sm:$0xff] %v4023_v52  ;;  %4502 = vrcp.f32 %v3912_v15  ;;  %v3999_v20 = vmul.f32 %v4541_v28, %v4481_v27  ;;  %v4558_v28 = vld [vmem:[%s5001_s21 + $0x90] sm:$0xff] }
 0x3df   : > { %v4485_v0 = vpop.eup %4484  ;;  %4504 = vpow2.f32 %v4276_v56  ;;  %v4000_v4 = vmul.f32 %v4542_v30, %v4483_v49  ;;  %4030 = vst [vmem:[%s5783_s28 + $0x10] sm:$0xff] %v3998_v17  ;;  %v4556_v56 = vld [vmem:[%s5001_s21 + $0x80] sm:$0xff]  ;;  %v4557_v49 = vld [vmem:[%s5001_s21 + $0x88] sm:$0xff] }
 0x3e0   : > { %v4487_v50 = vpop.eup %4486  ;;  %4506 = vpow2.f32 %v4278_v9  ;;  %v4001_v48 = vmul.f32 %v4543_v16, %v4485_v0  ;;  %4031 = vst [vmem:[%s5783_s28 + $0x18] sm:$0xff] %v3999_v20 }
 0x3e1   : > { %v4489_v42 = vpop.eup %4488  ;;  %4508 = vrcp.f32 %v3913_v36  ;;  %v4002_v12 = vmul.f32 %v4544_v33, %v4487_v50  ;;  %4032 = vst [vmem:[%s5783_s28 + $0x20] sm:$0xff] %v4000_v4  ;;  %v4560_v50 = vld [vmem:[%s5001_s21 + $0xa0] sm:$0xff]  ;;  %v4562_v33 = vld [vmem:[%s5001_s21 + $0xb0] sm:$0xff] }
 0x3e2   : > { %v4491_v11 = vpop.eup %4490  ;;  %4510 = vrcp.f32 %v3914_v13  ;;  %v4003_v62 = vmul.f32 %v4545_v31, %v4489_v42  ;;  %4033 = vst [vmem:[%s5783_s28 + $0x28] sm:$0xff] %v4001_v48  ;;  %v4561_v48 = vld [vmem:[%s5001_s21 + $0xa8] sm:$0xff] }
 0x3e3   : > { %v4493_v47 = vpop.eup %4492  ;;  %4512 = vrcp.f32 %v3915_v35  ;;  %v4004_v26 = vmul.f32 %v4546_v25, %v4491_v11  ;;  %4034 = vst [vmem:[%s5783_s28 + $0x30] sm:$0xff] %v4002_v12  ;;  %v4559_v35 = vld [vmem:[%s5001_s21 + $0x98] sm:$0xff] }
 0x3e4   : > { %v4495_v58 = vpop.eup %4494  ;;  %v4024_v63 = vmul.f32 %v4547_v8, %v4493_v47  ;;  %4514 = vrcp.f32 %v3916_v32  ;;  %4035 = vst [vmem:[%s5783_s28 + $0x38] sm:$0xff] %v4003_v62  ;;  %v4564_v47 = vld [vmem:[%s5001_s21 + $0xe8] sm:$0xff]  ;;  %v4565_v25 = vld [vmem:[%s5001_s21 + $0xf8] sm:$0xff] }
 0x3e5   : > { %v4497_v21 = vpop.eup %4496  ;;  %v4026_v10 = vmul.f32 %v4548_v55, %v4495_v58  ;;  %4516 = vrcp.f32 %v3917_v14  ;;  %4036 = vst [vmem:[%s5783_s28 + $0x40] sm:$0xff] %v4004_v26 }
 0x3e6   : > { %v4499_v7 = vpop.eup %4498  ;;  %4056 = vst [vmem:[%s5783_s28 + $0xe0] sm:$0xff] %v4024_v63  ;;  %4518 = vrcp.f32 %v3918_v24  ;;  %v4005_v22 = vmul.f32 %v4549_v19, %v4497_v21  ;;  %v4563_v24 = vld [vmem:[%s5001_s21 + $0xb8] sm:$0xff]  ;;  %s4756_s21 = smov [#allocation10]  }
 0x3e7   : > { %v4501_v38 = vpop.eup %4500  ;;  %4058 = vst [vmem:[%s5783_s28 + $0xf0] sm:$0xff] %v4026_v10  ;;  %4520 = vrcp.f32 %v3919_v29  ;;  %v4006_v60 = vmul.f32 %v4550_v18, %v4499_v7  ;;  %s4658_s30 = sshll.u32 %s4756_s21, 4  ;;  %s4659_s30 = int_to_ptr.vmem [resolvable:$false] %s4658_s30 }
 0x3e8   : > { %v4503_v41 = vpop.eup %4502  ;;  %4522 = vrcp.f32 %v3920_v1  ;;  %v4007_v23 = vmul.f32 %v4551_v6, %v4501_v38  ;;  %4037 = vst [vmem:[%s5783_s28 + $0x48] sm:$0xff] %v4005_v22  ;;  %s4660_s29 = scalar_lea.vmem %s4659_s30, 8192  ;;  %p4661_p1 = scmp.lt.s32.totalorder %s5869_s22, %s4659_s30 }
 0x3e9   : > { %v4505_v3 = vpop.eup %4504  ;;  %4524 = vrcp.f32 %v3921_v59  ;;  %v4008_v15 = vmul.f32 %v4552_v40, %v4503_v41  ;;  %4038 = vst [vmem:[%s5783_s28 + $0x50] sm:$0xff] %v4006_v60  ;;  %p4662_p2 = scmp.lt.s32.totalorder %s4660_s29, %s4654_s26 }
 0x3ea   : > { %v4507_v54 = vpop.eup %4506  ;;  %v3929_v51 = vadd.f32 1.0, %v4505_v3  ;;  %4526 = vrcp.f32 %v3922_v61  ;;  %4039 = vst [vmem:[%s5783_s28 + $0x58] sm:$0xff] %v4007_v23 }
 0x3eb   : > { %v4509_v37 = vpop.eup %4508  ;;  %v3931_v39 = vadd.f32 1.0, %v4507_v54  ;;  %4528 = vrcp.f32 %v3923_v46  ;;  %4040 = vst [vmem:[%s5783_s28 + $0x60] sm:$0xff] %v4008_v15  ;;  %p4663_p7 = por %p4662_p2, %p4661_p1 }
 0x3ec   : > { %v4511_v45 = vpop.eup %4510  ;;  %4530 = vrcp.f32 %v3929_v51  ;;  %v4009_v57 = vmul.f32 %v4553_v5, %v4509_v37 }
 0x3ed   : > { %v4513_v43 = vpop.eup %4512  ;;  %4532 = vrcp.f32 %v3931_v39  ;;  %v4010_v53 = vmul.f32 %v4554_v2, %v4511_v45  ;;  %p4664_p4 = pnand %p4663_p7, %p4657_p9 }
 0x3ee   : > { %v4515_v52 = vpop.eup %4514  ;;  %v4011_v27 = vmul.f32 %v4555_v44, %v4513_v43  ;;  %4041 = vst [vmem:[%s5783_s28 + $0x68] sm:$0xff] %v4009_v57 }
 0x3ef   : > { %v4517_v36 = vpop.eup %4516  ;;  %v4012_v34 = vmul.f32 %v4556_v56, %v4515_v52  ;;  %4042 = vst [vmem:[%s5783_s28 + $0x70] sm:$0xff] %v4010_v53 }
 0x3f0   : > { %v4519_v17 = vpop.eup %4518  ;;  %v4013_v13 = vmul.f32 %v4557_v49, %v4517_v36  ;;  %4043 = vst [vmem:[%s5783_s28 + $0x78] sm:$0xff] %v4011_v27 }
 0x3f1   : > { %v4521_v9 = vpop.eup %4520  ;;  %v4014_v20 = vmul.f32 %v4558_v28, %v4519_v17  ;;  %4044 = vst [vmem:[%s5783_s28 + $0x80] sm:$0xff] %v4012_v34 }
 0x3f2   : > { %v4523_v0 = vpop.eup %4522  ;;  %v4015_v30 = vmul.f32 %v4559_v35, %v4521_v9  ;;  %4045 = vst [vmem:[%s5783_s28 + $0x88] sm:$0xff] %v4013_v13 }
 0x3f3   : > { %v4525_v4 = vpop.eup %4524  ;;  %v4016_v32 = vmul.f32 %v4560_v50, %v4523_v0  ;;  %4046 = vst [vmem:[%s5783_s28 + $0x90] sm:$0xff] %v4014_v20 }
 0x3f4   : > { %v4527_v16 = vpop.eup %4526  ;;  %v4017_v42 = vmul.f32 %v4561_v48, %v4525_v4  ;;  %4047 = vst [vmem:[%s5783_s28 + $0x98] sm:$0xff] %v4015_v30 }
 0x3f5   : > { %v4529_v14 = vpop.eup %4528  ;;  %v4018_v12 = vmul.f32 %v4562_v33, %v4527_v16  ;;  %4048 = vst [vmem:[%s5783_s28 + $0xa0] sm:$0xff] %v4016_v32 }
 0x3f6   : > { %v4531_v11 = vpop.eup %4530  ;;  %v4019_v31 = vmul.f32 %v4563_v24, %v4529_v14  ;;  %4049 = vst [vmem:[%s5783_s28 + $0xa8] sm:$0xff] %v4017_v42 }
 0x3f7   : > { %v4533_v62 = vpop.eup %4532  ;;  %v4025_v29 = vmul.f32 %v4564_v47, %v4531_v11  ;;  %4050 = vst [vmem:[%s5783_s28 + $0xb0] sm:$0xff] %v4018_v12 }
 0x3f8   : > { %v4027_v26 = vmul.f32 %v4565_v25, %v4533_v62  ;;  %4051 = vst [vmem:[%s5783_s28 + $0xb8] sm:$0xff] %v4019_v31 }
 0x3f9   : > { %4057 = vst [vmem:[%s5783_s28 + $0xe8] sm:$0xff] %v4025_v29 }
 0x3fa   : > { %4059 = vst [vmem:[%s5783_s28 + $0xf8] sm:$0xff] %v4027_v26 }
 0x3fb   : > { %4667 = shalt.err (!%p4664_p4)
}
 0x3fc   : > { %s4668_s15 = scalar_lea.hbm %s5867_s11, 4096  ;;  %s4672_s13 = scalar_lea.hbm %s5928_s10, 8192 }
 0x3fd   : > { %p4669_p8 = scmp.ne.s32.totalorder %s5867_s11, %s4668_s15  ;;  %p4673_p10 = scmp.lt.u32.totalorder %s5867_s11, %s5928_s10 }
 0x3fe   : > { %p4674_p13 = scmp.lt.u32.totalorder %s4672_s13, %s4668_s15  ;;  %p4676_p12 = scmp.lt.u32.totalorder %s4668_s15, %s5867_s11 }
 0x3ff   : > { %p4670_p11 = pnand %p4669_p8, %p6014_p0 }
 0x400   : > { %p4675_p3 = por %p4674_p13, %p4673_p10 }
 0x401   : > { %p4671_p6 = pneg %p4670_p11 }
 0x402   : > { %p4677_p5 = por %p4676_p12, %p4675_p3 }
 0x404   : > { %p4678_p9 = pnand %p4677_p5, %p4671_p6 }
 0x406   : > { %4681 = shalt.err (!%p4678_p9)
}
 0x407   : > { %4327 = dma.vmem_to_hbm [thread:$0]  (%p6014_p0), %s5869_s22, 4096, %s5867_s11, %s4061_s18  }
 0x408 PF: > { %s6015_s23 = sld [smem:[#allocation15_spill]]  ;;  %s6016_s24 = sld [smem:[#allocation17_spill]] }
 0x409   : > { %p6018_p2 = scmp.ge.s32.totalorder %s4744_s20, 2 }
 0x40e   : > { %s4089_s28 = sand.u32 1, %s6015_s23   ;;  %p6017_p1 = scmp.ne.s32.totalorder %s6016_s24, 0 }
 0x40f   : > { %s4090_s17 = scalar_lea.sflag [#allocation6], %s4089_s28 }
 0x410   : > { %p4341_p7 = pnand %p6018_p2, %p6017_p1 }
 0x412   : > { %4719 = dma.done.wait (!%p4341_p7), %s4090_s17, 4096  }
 0x413   : > { %4721 = vsyncadd (!%p4341_p7), %s4090_s17, 4294963200  ;;  %s31_s20 = sadd.s32 1, %s4744_s20   ;;  %s6019_s25 = sld [smem:[#allocation16_spill]] }
 0x414   : > { %p28_p4 = scmp.ge.s32.totalorder %s31_s20, 4   ;;  %s6020_s17 = sld [smem:[#allocation19_spill]] }
 0x415   : > { %s6021_s27 = sld [smem:[#allocation18_spill]]  ;;  %s6022_s15 = smov %s4728_s16 }
 0x416   : > { %s6024_s18 = smov %s4740_s19  ;;  %30 = sbr.rel (!%p28_p4) target bundleno = 11 (0xb), region = 127 }
 0x419   : > { %s6023_s16 = smov %s6019_s25 }
 0x41b   : > { %s6025_s19 = smov %s6021_s27 }
 0x41d   :  { %4095 = vsyncpa [#allocation5], 1 }
 0x41e   :  { %4097 = vsyncpa [#allocation5 + $0x1], 1 }
 0x41f   :  { %4098 = vsyncpa [#allocation8], 1 }
 0x420   :  { %4100 = vsyncpa [#allocation8 + $0x1], 1 }
 0x421   :  { %4101 = vsyncpa [#allocation6], 1 }
 0x422   :  { %4103 = vsyncpa [#allocation6 + $0x1], 1 }

</bundles_post_ra>
